<compile_context>
chip_gen: v7x
topology: tpu7x:2x2x1
jax: 0.10.0
libtpu: 0.0.40
codegen_flags: <defaults>
</compile_context>

<pallas_src>
import functools

import jax
import jax.numpy as jnp
from jax.experimental import pallas as pl
from jax.experimental.pallas import tpu as pltpu


# ----------------------------------------------------------------------------
# In-kernel building blocks (pure jnp on VMEM-resident values)
# ----------------------------------------------------------------------------
def _conv3x3_flat(x, w_mat, b, W, activation):
    """3x3 same-padding conv on a flattened (Cin, H*W) activation slab.

    x:      (Cin, H*W)   channels on sublanes, flattened spatial on lanes
    w_mat:  (Cout, 9*Cin) im2col weight, tap-major: col (t*Cin + ci), t=kh*3+kw
    b:      (Cout, 1)
    returns (Cout, H*W)
    """
    cin, hw = x.shape
    pad = W + 1                                   # covers shifts in [-(W+1), W+1]
    zeros = jnp.zeros((cin, pad), dtype=jnp.float32)
    xz = jnp.concatenate([zeros, x, zeros], axis=1)   # flat zero "same" padding

    # Horizontal-edge masks (W is a power of two at every layer here).
    col = jax.lax.broadcasted_iota(jnp.int32, (1, hw), 1)
    wpos = col & (W - 1)
    not_first_col = wpos > 0                      # tap reads w-1 -> invalid at w==0
    not_last_col = wpos < (W - 1)                 # tap reads w+1 -> invalid at w==W-1

    slabs = []
    for dh in (-1, 0, 1):
        for dw in (-1, 0, 1):
            k = dh * W + dw
            s = jax.lax.slice(xz, (0, pad + k), (cin, pad + k + hw))
            if dw == -1:
                s = jnp.where(not_first_col, s, 0.0)
            elif dw == 1:
                s = jnp.where(not_last_col, s, 0.0)
            slabs.append(s)
    patches = jnp.concatenate(slabs, axis=0)      # (9*Cin, H*W) im2col slab

    acc = jnp.dot(w_mat, patches, preferred_element_type=jnp.float32) + b
    if activation == "relu":
        return jnp.maximum(acc, 0.0)
    # sigmoid
    return 1.0 / (1.0 + jnp.exp(-acc))


def _maxpool2x2_flat(x, W, sel):
    """2x2 max-pool on a flattened (C, H*W) slab via shifted maxes + 0/1 matmul.

    x:   (C, H*W)
    sel: (H*W, H*W // 4) 0/1 selection matrix picking the top-left of each
         2x2 window (garbage at non-selected positions is discarded).
    """
    c, hw = x.shape
    zeros = jnp.zeros((c, W), dtype=jnp.float32)
    xz = jnp.concatenate([x, zeros], axis=1)
    right = jax.lax.slice(xz, (0, 1), (c, 1 + hw))        # x[:, p+1]
    maxh = jnp.maximum(x, right)
    mz = jnp.concatenate([maxh, zeros], axis=1)
    below = jax.lax.slice(mz, (0, W), (c, W + hw))        # maxh[:, p+W]
    maxv = jnp.maximum(maxh, below)                       # full 2x2 max at even (h, w)
    return jnp.dot(maxv, sel, preferred_element_type=jnp.float32)


# ----------------------------------------------------------------------------
# Fused forward kernel (one batch element per grid step)
# ----------------------------------------------------------------------------
def _fused_autoencoder_kernel(x_ref,
                              w1_ref, b1_ref, w2_ref, b2_ref,
                              w3_ref, b3_ref, w4_ref, b4_ref,
                              sel1_ref, sel2_ref, up1_ref, up2_ref,
                              o_ref, *, H, W):
    x = x_ref[0]                                                       # (4, H*W)
    H2, W2 = H // 2, W // 2

    # encoder
    h1 = _conv3x3_flat(x, w1_ref[...], b1_ref[...], W, "relu")         # (8, H*W)
    p1 = _maxpool2x2_flat(h1, W, sel1_ref[...])                        # (8, H*W/4)
    h2 = _conv3x3_flat(p1, w2_ref[...], b2_ref[...], W2, "relu")       # (16, H*W/4)
    z = _maxpool2x2_flat(h2, W2, sel2_ref[...])                        # (16, H*W/16)

    # decoder
    u1 = jnp.dot(z, up1_ref[...], preferred_element_type=jnp.float32)  # (16, H*W/4)
    d1 = _conv3x3_flat(u1, w3_ref[...], b3_ref[...], W2, "relu")       # (8, H*W/4)
    u2 = jnp.dot(d1, up2_ref[...], preferred_element_type=jnp.float32) # (8, H*W)
    d2 = _conv3x3_flat(u2, w4_ref[...], b4_ref[...], W, "sigmoid")     # (4, H*W)

    o_ref[0] = d2.astype(o_ref.dtype)


# ----------------------------------------------------------------------------
# Wrapper: parameter repack + constant pool/upsample matrices + pallas_call
# ----------------------------------------------------------------------------
def _prep_conv_weight(w_hwio):
    """(3, 3, Cin, Cout) HWIO -> (Cout, 9*Cin) im2col weight, tap-major."""
    kh, kw, cin, cout = w_hwio.shape
    return (w_hwio.reshape(kh * kw, cin, cout)
            .transpose(2, 0, 1)
            .reshape(cout, kh * kw * cin))


def _pool_select_matrix(h, w):
    """(h*w, h*w//4) 0/1 matrix selecting the top-left of each 2x2 window."""
    ho, wo = h // 2, w // 2
    q = jnp.arange(ho * wo)
    src = (q // wo) * (2 * w) + (q % wo) * 2
    return (jnp.arange(h * w)[:, None] == src[None, :]).astype(jnp.float32)


def _upsample_matrix(hc, wc):
    """(hc*wc, 4*hc*wc) 0/1 matrix for x2 nearest-neighbor upsampling."""
    hf, wf = 2 * hc, 2 * wc
    p = jnp.arange(hf * wf)
    src = ((p // wf) // 2) * wc + (p % wf) // 2
    return (jnp.arange(hc * wc)[:, None] == src[None, :]).astype(jnp.float32)


@jax.jit
def autoencoder_forward(params, x_nchw):
    n, c, h, w = x_nchw.shape
    assert h % 4 == 0 and w % 4 == 0
    assert (w & (w - 1)) == 0 and ((w // 2) & (w // 2 - 1)) == 0  # power-of-two W

    xf = x_nchw.reshape(n, c, h * w)                      # free: flattened NCHW

    w1, b1 = params["enc1"]
    w2, b2 = params["enc2"]
    w3, b3 = params["dec1"]
    w4, b4 = params["dec2"]
    w1m, w2m, w3m, w4m = (_prep_conv_weight(w1), _prep_conv_weight(w2),
                          _prep_conv_weight(w3), _prep_conv_weight(w4))
    b1m, b2m, b3m, b4m = (b1.reshape(-1, 1), b2.reshape(-1, 1),
                          b3.reshape(-1, 1), b4.reshape(-1, 1))

    sel1 = _pool_select_matrix(h, w)                      # (256, 64)
    sel2 = _pool_select_matrix(h // 2, w // 2)            # (64, 16)
    up1 = _upsample_matrix(h // 4, w // 4)                # (16, 64)
    up2 = _upsample_matrix(h // 2, w // 2)                # (64, 256)

    cout_final = w4m.shape[0]
    full2d = lambda arr: pl.BlockSpec(arr.shape, lambda i: (0, 0))

    kernel = functools.partial(_fused_autoencoder_kernel, H=h, W=w)
    out_flat = pl.pallas_call(
        kernel,
        out_shape=jax.ShapeDtypeStruct((n, cout_final, h * w), jnp.float32),
        grid=(n,),
        in_specs=[
            pl.BlockSpec((1, c, h * w), lambda i: (i, 0, 0)),
            full2d(w1m), full2d(b1m), full2d(w2m), full2d(b2m),
            full2d(w3m), full2d(b3m), full2d(w4m), full2d(b4m),
            full2d(sel1), full2d(sel2), full2d(up1), full2d(up2),
        ],
        out_specs=pl.BlockSpec((1, cout_final, h * w), lambda i: (i, 0, 0)),
        compiler_params=pltpu.CompilerParams(dimension_semantics=("parallel",)),
    )(xf, w1m, b1m, w2m, b2m, w3m, b3m, w4m, b4m, sel1, sel2, up1, up2)

    return out_flat.reshape(n, cout_final, h, w)          # NCHW like PyTorch


# ----------------------------------------------------------------------------
# Parameters (deterministic, PyTorch-default-like uniform init), HWIO storage
# ----------------------------------------------------------------------------
def init_conv_params(key, cin, cout):
    kw, kb = jax.random.split(key)
    bound = 1.0 / jnp.sqrt(cin * 9.0)
    w = jax.random.uniform(kw, (3, 3, cin, cout), jnp.float32, -bound, bound)
    b = jax.random.uniform(kb, (cout,), jnp.float32, -bound, bound)
    return w, b


def init_params(key):
    keys = jax.random.split(key, 4)
    return {
        "enc1": init_conv_params(keys[0], 4, 8),
        "enc2": init_conv_params(keys[1], 8, 16),
        "dec1": init_conv_params(keys[2], 16, 8),
        "dec2": init_conv_params(keys[3], 8, 4),
    }


# ----------------------------------------------------------------------------
# Pure-JAX reference (NCHW throughout)
# ----------------------------------------------------------------------------
def _conv_ref(x, w_hwio, b, activation):
    y = jax.lax.conv_general_dilated(
        x, w_hwio, window_strides=(1, 1), padding="SAME",
        dimension_numbers=("NCHW", "HWIO", "NCHW"))
    y = y + b[None, :, None, None]
    if activation == "relu":
        return jnp.maximum(y, 0.0)
    return 1.0 / (1.0 + jnp.exp(-y))


def _pool_ref(x):
    return jax.lax.reduce_window(x, -jnp.inf, jax.lax.max,
                                 (1, 1, 2, 2), (1, 1, 2, 2), "VALID")


def _upsample_ref(x):
    return jnp.repeat(jnp.repeat(x, 2, axis=2), 2, axis=3)


def autoencoder_reference(params, x_nchw):
    x = _conv_ref(x_nchw, *params["enc1"], activation="relu")
    x = _pool_ref(x)
    x = _conv_ref(x, *params["enc2"], activation="relu")
    z = _pool_ref(x)
    y = _upsample_ref(z)
    y = _conv_ref(y, *params["dec1"], activation="relu")
    y = _upsample_ref(y)
    y = _conv_ref(y, *params["dec2"], activation="sigmoid")
    return y


if __name__ == "__main__":
    key = jax.random.PRNGKey(0)
    kx, kp = jax.random.split(key)
    x = jax.random.normal(kx, (2, 4, 16, 16), dtype=jnp.float32)   # NCHW like PyTorch
    params = init_params(kp)

    out = jax.block_until_ready(autoencoder_forward(params, x))
    ref = jax.block_until_ready(autoencoder_reference(params, x))

    assert out.shape == (2, 4, 16, 16), out.shape
    assert jnp.allclose(out, ref, atol=1e-4, rtol=1e-4), float(jnp.max(jnp.abs(out - ref)))
    print("KERNEL_OK")
</pallas_src>

<mosaic_0001>
module attributes {stable_mosaic.version = 11 : i64} {
  func.func @_fused_autoencoder_kernel(%arg0: i32, %arg1: memref<1x4x256xf32, #tpu.memory_space<vmem>>, %arg2: memref<8x36xf32, #tpu.memory_space<vmem>>, %arg3: memref<8x1xf32, #tpu.memory_space<vmem>>, %arg4: memref<16x72xf32, #tpu.memory_space<vmem>>, %arg5: memref<16x1xf32, #tpu.memory_space<vmem>>, %arg6: memref<8x144xf32, #tpu.memory_space<vmem>>, %arg7: memref<8x1xf32, #tpu.memory_space<vmem>>, %arg8: memref<4x72xf32, #tpu.memory_space<vmem>>, %arg9: memref<4x1xf32, #tpu.memory_space<vmem>>, %arg10: memref<256x64xf32, #tpu.memory_space<vmem>>, %arg11: memref<64x16xf32, #tpu.memory_space<vmem>>, %arg12: memref<16x64xf32, #tpu.memory_space<vmem>>, %arg13: memref<64x256xf32, #tpu.memory_space<vmem>>, %arg14: memref<1x4x256xf32, #tpu.memory_space<vmem>>) attributes {dimension_semantics = [#tpu.dimension_semantics<parallel>], iteration_bounds = array<i64: 2>, scalar_prefetch = 0 : i64, scratch_operands = 0 : i64, tpu.core_type = #tpu.core_type<tc>, window_params = [{transform_indices = @transform_0, window_bounds = array<i64: 1, 4, 256>}, {pipeline_mode = #tpu.pipeline_mode<synchronous>, transform_indices = @transform_1, window_bounds = array<i64: 8, 36>}, {pipeline_mode = #tpu.pipeline_mode<synchronous>, transform_indices = @transform_2, window_bounds = array<i64: 8, 1>}, {pipeline_mode = #tpu.pipeline_mode<synchronous>, transform_indices = @transform_3, window_bounds = array<i64: 16, 72>}, {pipeline_mode = #tpu.pipeline_mode<synchronous>, transform_indices = @transform_4, window_bounds = array<i64: 16, 1>}, {pipeline_mode = #tpu.pipeline_mode<synchronous>, transform_indices = @transform_5, window_bounds = array<i64: 8, 144>}, {pipeline_mode = #tpu.pipeline_mode<synchronous>, transform_indices = @transform_6, window_bounds = array<i64: 8, 1>}, {pipeline_mode = #tpu.pipeline_mode<synchronous>, transform_indices = @transform_7, window_bounds = array<i64: 4, 72>}, {pipeline_mode = #tpu.pipeline_mode<synchronous>, transform_indices = @transform_8, window_bounds = array<i64: 4, 1>}, {pipeline_mode = #tpu.pipeline_mode<synchronous>, transform_indices = @transform_9, window_bounds = array<i64: 256, 64>}, {pipeline_mode = #tpu.pipeline_mode<synchronous>, transform_indices = @transform_10, window_bounds = array<i64: 64, 16>}, {pipeline_mode = #tpu.pipeline_mode<synchronous>, transform_indices = @transform_11, window_bounds = array<i64: 16, 64>}, {pipeline_mode = #tpu.pipeline_mode<synchronous>, transform_indices = @transform_12, window_bounds = array<i64: 64, 256>}, {transform_indices = @transform_13, window_bounds = array<i64: 1, 4, 256>}]} {
    %c0 = arith.constant 0 : index
    %c0_0 = arith.constant 0 : index
    %c0_1 = arith.constant 0 : index
    %0 = vector.load %arg1[%c0, %c0_0, %c0_1] : memref<1x4x256xf32, #tpu.memory_space<vmem>>, vector<1x4x256xf32>
    %1 = vector.shape_cast %0 : vector<1x4x256xf32> to vector<4x256xf32>
    %c0_2 = arith.constant 0 : index
    %c0_3 = arith.constant 0 : index
    %2 = vector.load %arg2[%c0_2, %c0_3] : memref<8x36xf32, #tpu.memory_space<vmem>>, vector<8x36xf32>
    %c0_4 = arith.constant 0 : index
    %c0_5 = arith.constant 0 : index
    %3 = vector.load %arg3[%c0_4, %c0_5] : memref<8x1xf32, #tpu.memory_space<vmem>>, vector<8x1xf32>
    %cst = arith.constant 0.000000e+00 : f32
    %4 = vector.broadcast %cst : f32 to vector<4x17xf32>
    %5 = tpu.concatenate %4, %1, %4 in 1 : vector<4x17xf32>, vector<4x256xf32>, vector<4x17xf32> -> vector<4x290xf32>
    %6 = tpu.iota {dimensions = array<i32: 1>} : vector<1x256xi32>
    %c15_i32 = arith.constant 15 : i32
    %7 = vector.broadcast %c15_i32 : i32 to vector<1x256xi32>
    %8 = arith.andi %6, %7 : vector<1x256xi32>
    %c0_i32 = arith.constant 0 : i32
    %9 = vector.broadcast %c0_i32 : i32 to vector<1x256xi32>
    %10 = arith.cmpi sgt, %8, %9 : vector<1x256xi32>
    %c15_i32_6 = arith.constant 15 : i32
    %11 = vector.broadcast %c15_i32_6 : i32 to vector<1x256xi32>
    %12 = arith.cmpi slt, %8, %11 : vector<1x256xi32>
    %13 = vector.extract_strided_slice %5 {offsets = [0, 0], sizes = [4, 256], strides = [1, 1]} : vector<4x290xf32> to vector<4x256xf32>
    %cst_7 = arith.constant 0.000000e+00 : f32
    %14 = vector.shape_cast %10 : vector<1x256xi1> to vector<1x256xi1>
    %15 = vector.broadcast %14 : vector<1x256xi1> to vector<4x256xi1>
    %16 = vector.broadcast %cst_7 : f32 to vector<4x256xf32>
    %17 = arith.select %15, %13, %16 : vector<4x256xi1>, vector<4x256xf32>
    %18 = vector.extract_strided_slice %5 {offsets = [0, 1], sizes = [4, 256], strides = [1, 1]} : vector<4x290xf32> to vector<4x256xf32>
    %19 = vector.extract_strided_slice %5 {offsets = [0, 2], sizes = [4, 256], strides = [1, 1]} : vector<4x290xf32> to vector<4x256xf32>
    %cst_8 = arith.constant 0.000000e+00 : f32
    %20 = vector.shape_cast %12 : vector<1x256xi1> to vector<1x256xi1>
    %21 = vector.broadcast %20 : vector<1x256xi1> to vector<4x256xi1>
    %22 = vector.broadcast %cst_8 : f32 to vector<4x256xf32>
    %23 = arith.select %21, %19, %22 : vector<4x256xi1>, vector<4x256xf32>
    %24 = vector.extract_strided_slice %5 {offsets = [0, 16], sizes = [4, 256], strides = [1, 1]} : vector<4x290xf32> to vector<4x256xf32>
    %cst_9 = arith.constant 0.000000e+00 : f32
    %25 = vector.shape_cast %10 : vector<1x256xi1> to vector<1x256xi1>
    %26 = vector.broadcast %25 : vector<1x256xi1> to vector<4x256xi1>
    %27 = vector.broadcast %cst_9 : f32 to vector<4x256xf32>
    %28 = arith.select %26, %24, %27 : vector<4x256xi1>, vector<4x256xf32>
    %29 = vector.extract_strided_slice %5 {offsets = [0, 17], sizes = [4, 256], strides = [1, 1]} : vector<4x290xf32> to vector<4x256xf32>
    %30 = vector.extract_strided_slice %5 {offsets = [0, 18], sizes = [4, 256], strides = [1, 1]} : vector<4x290xf32> to vector<4x256xf32>
    %cst_10 = arith.constant 0.000000e+00 : f32
    %31 = vector.shape_cast %12 : vector<1x256xi1> to vector<1x256xi1>
    %32 = vector.broadcast %31 : vector<1x256xi1> to vector<4x256xi1>
    %33 = vector.broadcast %cst_10 : f32 to vector<4x256xf32>
    %34 = arith.select %32, %30, %33 : vector<4x256xi1>, vector<4x256xf32>
    %35 = vector.extract_strided_slice %5 {offsets = [0, 32], sizes = [4, 256], strides = [1, 1]} : vector<4x290xf32> to vector<4x256xf32>
    %cst_11 = arith.constant 0.000000e+00 : f32
    %36 = vector.shape_cast %10 : vector<1x256xi1> to vector<1x256xi1>
    %37 = vector.broadcast %36 : vector<1x256xi1> to vector<4x256xi1>
    %38 = vector.broadcast %cst_11 : f32 to vector<4x256xf32>
    %39 = arith.select %37, %35, %38 : vector<4x256xi1>, vector<4x256xf32>
    %40 = vector.extract_strided_slice %5 {offsets = [0, 33], sizes = [4, 256], strides = [1, 1]} : vector<4x290xf32> to vector<4x256xf32>
    %41 = vector.extract_strided_slice %5 {offsets = [0, 34], sizes = [4, 256], strides = [1, 1]} : vector<4x290xf32> to vector<4x256xf32>
    %cst_12 = arith.constant 0.000000e+00 : f32
    %42 = vector.shape_cast %12 : vector<1x256xi1> to vector<1x256xi1>
    %43 = vector.broadcast %42 : vector<1x256xi1> to vector<4x256xi1>
    %44 = vector.broadcast %cst_12 : f32 to vector<4x256xf32>
    %45 = arith.select %43, %41, %44 : vector<4x256xi1>, vector<4x256xf32>
    %46 = tpu.concatenate %17, %18, %23, %28, %29, %34, %39, %40, %45 in 0 : vector<4x256xf32>, vector<4x256xf32>, vector<4x256xf32>, vector<4x256xf32>, vector<4x256xf32>, vector<4x256xf32>, vector<4x256xf32>, vector<4x256xf32>, vector<4x256xf32> -> vector<36x256xf32>
    %cst_13 = arith.constant dense<0.000000e+00> : vector<8x256xf32>
    %47 = tpu.matmul %2, %46, %cst_13 {dimension_numbers = #tpu.dot_dimension_numbers<[1], [0], [0], [1], [0, 0, 1, 1], [], []>} : vector<8x36xf32>, vector<36x256xf32>, vector<8x256xf32> -> vector<8x256xf32>
    %48 = vector.broadcast %3 : vector<8x1xf32> to vector<8x256xf32>
    %49 = arith.addf %47, %48 : vector<8x256xf32>
    %cst_14 = arith.constant 0.000000e+00 : f32
    %50 = vector.broadcast %cst_14 : f32 to vector<8x256xf32>
    %51 = arith.maximumf %49, %50 : vector<8x256xf32>
    %c0_15 = arith.constant 0 : index
    %c0_16 = arith.constant 0 : index
    %52 = vector.load %arg10[%c0_15, %c0_16] : memref<256x64xf32, #tpu.memory_space<vmem>>, vector<256x64xf32>
    %cst_17 = arith.constant 0.000000e+00 : f32
    %53 = vector.broadcast %cst_17 : f32 to vector<8x16xf32>
    %54 = tpu.concatenate %51, %53 in 1 : vector<8x256xf32>, vector<8x16xf32> -> vector<8x272xf32>
    %55 = vector.extract_strided_slice %54 {offsets = [0, 1], sizes = [8, 256], strides = [1, 1]} : vector<8x272xf32> to vector<8x256xf32>
    %56 = arith.maximumf %51, %55 : vector<8x256xf32>
    %57 = tpu.concatenate %56, %53 in 1 : vector<8x256xf32>, vector<8x16xf32> -> vector<8x272xf32>
    %58 = vector.extract_strided_slice %57 {offsets = [0, 16], sizes = [8, 256], strides = [1, 1]} : vector<8x272xf32> to vector<8x256xf32>
    %59 = arith.maximumf %56, %58 : vector<8x256xf32>
    %cst_18 = arith.constant dense<0.000000e+00> : vector<8x64xf32>
    %60 = tpu.matmul %59, %52, %cst_18 {dimension_numbers = #tpu.dot_dimension_numbers<[1], [0], [0], [1], [0, 0, 1, 1], [], []>} : vector<8x256xf32>, vector<256x64xf32>, vector<8x64xf32> -> vector<8x64xf32>
    %c0_19 = arith.constant 0 : index
    %c0_20 = arith.constant 0 : index
    %61 = vector.load %arg4[%c0_19, %c0_20] : memref<16x72xf32, #tpu.memory_space<vmem>>, vector<16x72xf32>
    %c0_21 = arith.constant 0 : index
    %c0_22 = arith.constant 0 : index
    %62 = vector.load %arg5[%c0_21, %c0_22] : memref<16x1xf32, #tpu.memory_space<vmem>>, vector<16x1xf32>
    %cst_23 = arith.constant 0.000000e+00 : f32
    %63 = vector.broadcast %cst_23 : f32 to vector<8x9xf32>
    %64 = tpu.concatenate %63, %60, %63 in 1 : vector<8x9xf32>, vector<8x64xf32>, vector<8x9xf32> -> vector<8x82xf32>
    %65 = tpu.iota {dimensions = array<i32: 1>} : vector<1x64xi32>
    %c7_i32 = arith.constant 7 : i32
    %66 = vector.broadcast %c7_i32 : i32 to vector<1x64xi32>
    %67 = arith.andi %65, %66 : vector<1x64xi32>
    %c0_i32_24 = arith.constant 0 : i32
    %68 = vector.broadcast %c0_i32_24 : i32 to vector<1x64xi32>
    %69 = arith.cmpi sgt, %67, %68 : vector<1x64xi32>
    %c7_i32_25 = arith.constant 7 : i32
    %70 = vector.broadcast %c7_i32_25 : i32 to vector<1x64xi32>
    %71 = arith.cmpi slt, %67, %70 : vector<1x64xi32>
    %72 = vector.extract_strided_slice %64 {offsets = [0, 0], sizes = [8, 64], strides = [1, 1]} : vector<8x82xf32> to vector<8x64xf32>
    %cst_26 = arith.constant 0.000000e+00 : f32
    %73 = vector.shape_cast %69 : vector<1x64xi1> to vector<1x64xi1>
    %74 = vector.broadcast %73 : vector<1x64xi1> to vector<8x64xi1>
    %75 = vector.broadcast %cst_26 : f32 to vector<8x64xf32>
    %76 = arith.select %74, %72, %75 : vector<8x64xi1>, vector<8x64xf32>
    %77 = vector.extract_strided_slice %64 {offsets = [0, 1], sizes = [8, 64], strides = [1, 1]} : vector<8x82xf32> to vector<8x64xf32>
    %78 = vector.extract_strided_slice %64 {offsets = [0, 2], sizes = [8, 64], strides = [1, 1]} : vector<8x82xf32> to vector<8x64xf32>
    %cst_27 = arith.constant 0.000000e+00 : f32
    %79 = vector.shape_cast %71 : vector<1x64xi1> to vector<1x64xi1>
    %80 = vector.broadcast %79 : vector<1x64xi1> to vector<8x64xi1>
    %81 = vector.broadcast %cst_27 : f32 to vector<8x64xf32>
    %82 = arith.select %80, %78, %81 : vector<8x64xi1>, vector<8x64xf32>
    %83 = vector.extract_strided_slice %64 {offsets = [0, 8], sizes = [8, 64], strides = [1, 1]} : vector<8x82xf32> to vector<8x64xf32>
    %cst_28 = arith.constant 0.000000e+00 : f32
    %84 = vector.shape_cast %69 : vector<1x64xi1> to vector<1x64xi1>
    %85 = vector.broadcast %84 : vector<1x64xi1> to vector<8x64xi1>
    %86 = vector.broadcast %cst_28 : f32 to vector<8x64xf32>
    %87 = arith.select %85, %83, %86 : vector<8x64xi1>, vector<8x64xf32>
    %88 = vector.extract_strided_slice %64 {offsets = [0, 9], sizes = [8, 64], strides = [1, 1]} : vector<8x82xf32> to vector<8x64xf32>
    %89 = vector.extract_strided_slice %64 {offsets = [0, 10], sizes = [8, 64], strides = [1, 1]} : vector<8x82xf32> to vector<8x64xf32>
    %cst_29 = arith.constant 0.000000e+00 : f32
    %90 = vector.shape_cast %71 : vector<1x64xi1> to vector<1x64xi1>
    %91 = vector.broadcast %90 : vector<1x64xi1> to vector<8x64xi1>
    %92 = vector.broadcast %cst_29 : f32 to vector<8x64xf32>
    %93 = arith.select %91, %89, %92 : vector<8x64xi1>, vector<8x64xf32>
    %94 = vector.extract_strided_slice %64 {offsets = [0, 16], sizes = [8, 64], strides = [1, 1]} : vector<8x82xf32> to vector<8x64xf32>
    %cst_30 = arith.constant 0.000000e+00 : f32
    %95 = vector.shape_cast %69 : vector<1x64xi1> to vector<1x64xi1>
    %96 = vector.broadcast %95 : vector<1x64xi1> to vector<8x64xi1>
    %97 = vector.broadcast %cst_30 : f32 to vector<8x64xf32>
    %98 = arith.select %96, %94, %97 : vector<8x64xi1>, vector<8x64xf32>
    %99 = vector.extract_strided_slice %64 {offsets = [0, 17], sizes = [8, 64], strides = [1, 1]} : vector<8x82xf32> to vector<8x64xf32>
    %100 = vector.extract_strided_slice %64 {offsets = [0, 18], sizes = [8, 64], strides = [1, 1]} : vector<8x82xf32> to vector<8x64xf32>
    %cst_31 = arith.constant 0.000000e+00 : f32
    %101 = vector.shape_cast %71 : vector<1x64xi1> to vector<1x64xi1>
    %102 = vector.broadcast %101 : vector<1x64xi1> to vector<8x64xi1>
    %103 = vector.broadcast %cst_31 : f32 to vector<8x64xf32>
    %104 = arith.select %102, %100, %103 : vector<8x64xi1>, vector<8x64xf32>
    %105 = tpu.concatenate %76, %77, %82, %87, %88, %93, %98, %99, %104 in 0 : vector<8x64xf32>, vector<8x64xf32>, vector<8x64xf32>, vector<8x64xf32>, vector<8x64xf32>, vector<8x64xf32>, vector<8x64xf32>, vector<8x64xf32>, vector<8x64xf32> -> vector<72x64xf32>
    %cst_32 = arith.constant dense<0.000000e+00> : vector<16x64xf32>
    %106 = tpu.matmul %61, %105, %cst_32 {dimension_numbers = #tpu.dot_dimension_numbers<[1], [0], [0], [1], [0, 0, 1, 1], [], []>} : vector<16x72xf32>, vector<72x64xf32>, vector<16x64xf32> -> vector<16x64xf32>
    %107 = vector.broadcast %62 : vector<16x1xf32> to vector<16x64xf32>
    %108 = arith.addf %106, %107 : vector<16x64xf32>
    %cst_33 = arith.constant 0.000000e+00 : f32
    %109 = vector.broadcast %cst_33 : f32 to vector<16x64xf32>
    %110 = arith.maximumf %108, %109 : vector<16x64xf32>
    %c0_34 = arith.constant 0 : index
    %c0_35 = arith.constant 0 : index
    %111 = vector.load %arg11[%c0_34, %c0_35] : memref<64x16xf32, #tpu.memory_space<vmem>>, vector<64x16xf32>
    %cst_36 = arith.constant 0.000000e+00 : f32
    %112 = vector.broadcast %cst_36 : f32 to vector<16x8xf32>
    %113 = tpu.concatenate %110, %112 in 1 : vector<16x64xf32>, vector<16x8xf32> -> vector<16x72xf32>
    %114 = vector.extract_strided_slice %113 {offsets = [0, 1], sizes = [16, 64], strides = [1, 1]} : vector<16x72xf32> to vector<16x64xf32>
    %115 = arith.maximumf %110, %114 : vector<16x64xf32>
    %116 = tpu.concatenate %115, %112 in 1 : vector<16x64xf32>, vector<16x8xf32> -> vector<16x72xf32>
    %117 = vector.extract_strided_slice %116 {offsets = [0, 8], sizes = [16, 64], strides = [1, 1]} : vector<16x72xf32> to vector<16x64xf32>
    %118 = arith.maximumf %115, %117 : vector<16x64xf32>
    %cst_37 = arith.constant dense<0.000000e+00> : vector<16x16xf32>
    %119 = tpu.matmul %118, %111, %cst_37 {dimension_numbers = #tpu.dot_dimension_numbers<[1], [0], [0], [1], [0, 0, 1, 1], [], []>} : vector<16x64xf32>, vector<64x16xf32>, vector<16x16xf32> -> vector<16x16xf32>
    %c0_38 = arith.constant 0 : index
    %c0_39 = arith.constant 0 : index
    %120 = vector.load %arg12[%c0_38, %c0_39] : memref<16x64xf32, #tpu.memory_space<vmem>>, vector<16x64xf32>
    %cst_40 = arith.constant dense<0.000000e+00> : vector<16x64xf32>
    %121 = tpu.matmul %119, %120, %cst_40 {dimension_numbers = #tpu.dot_dimension_numbers<[1], [0], [0], [1], [0, 0, 1, 1], [], []>} : vector<16x16xf32>, vector<16x64xf32>, vector<16x64xf32> -> vector<16x64xf32>
    %c0_41 = arith.constant 0 : index
    %c0_42 = arith.constant 0 : index
    %122 = vector.load %arg6[%c0_41, %c0_42] : memref<8x144xf32, #tpu.memory_space<vmem>>, vector<8x144xf32>
    %c0_43 = arith.constant 0 : index
    %c0_44 = arith.constant 0 : index
    %123 = vector.load %arg7[%c0_43, %c0_44] : memref<8x1xf32, #tpu.memory_space<vmem>>, vector<8x1xf32>
    %cst_45 = arith.constant 0.000000e+00 : f32
    %124 = vector.broadcast %cst_45 : f32 to vector<16x9xf32>
    %125 = tpu.concatenate %124, %121, %124 in 1 : vector<16x9xf32>, vector<16x64xf32>, vector<16x9xf32> -> vector<16x82xf32>
    %126 = tpu.iota {dimensions = array<i32: 1>} : vector<1x64xi32>
    %c7_i32_46 = arith.constant 7 : i32
    %127 = vector.broadcast %c7_i32_46 : i32 to vector<1x64xi32>
    %128 = arith.andi %126, %127 : vector<1x64xi32>
    %c0_i32_47 = arith.constant 0 : i32
    %129 = vector.broadcast %c0_i32_47 : i32 to vector<1x64xi32>
    %130 = arith.cmpi sgt, %128, %129 : vector<1x64xi32>
    %c7_i32_48 = arith.constant 7 : i32
    %131 = vector.broadcast %c7_i32_48 : i32 to vector<1x64xi32>
    %132 = arith.cmpi slt, %128, %131 : vector<1x64xi32>
    %133 = vector.extract_strided_slice %125 {offsets = [0, 0], sizes = [16, 64], strides = [1, 1]} : vector<16x82xf32> to vector<16x64xf32>
    %cst_49 = arith.constant 0.000000e+00 : f32
    %134 = vector.shape_cast %130 : vector<1x64xi1> to vector<1x64xi1>
    %135 = vector.broadcast %134 : vector<1x64xi1> to vector<16x64xi1>
    %136 = vector.broadcast %cst_49 : f32 to vector<16x64xf32>
    %137 = arith.select %135, %133, %136 : vector<16x64xi1>, vector<16x64xf32>
    %138 = vector.extract_strided_slice %125 {offsets = [0, 1], sizes = [16, 64], strides = [1, 1]} : vector<16x82xf32> to vector<16x64xf32>
    %139 = vector.extract_strided_slice %125 {offsets = [0, 2], sizes = [16, 64], strides = [1, 1]} : vector<16x82xf32> to vector<16x64xf32>
    %cst_50 = arith.constant 0.000000e+00 : f32
    %140 = vector.shape_cast %132 : vector<1x64xi1> to vector<1x64xi1>
    %141 = vector.broadcast %140 : vector<1x64xi1> to vector<16x64xi1>
    %142 = vector.broadcast %cst_50 : f32 to vector<16x64xf32>
    %143 = arith.select %141, %139, %142 : vector<16x64xi1>, vector<16x64xf32>
    %144 = vector.extract_strided_slice %125 {offsets = [0, 8], sizes = [16, 64], strides = [1, 1]} : vector<16x82xf32> to vector<16x64xf32>
    %cst_51 = arith.constant 0.000000e+00 : f32
    %145 = vector.shape_cast %130 : vector<1x64xi1> to vector<1x64xi1>
    %146 = vector.broadcast %145 : vector<1x64xi1> to vector<16x64xi1>
    %147 = vector.broadcast %cst_51 : f32 to vector<16x64xf32>
    %148 = arith.select %146, %144, %147 : vector<16x64xi1>, vector<16x64xf32>
    %149 = vector.extract_strided_slice %125 {offsets = [0, 9], sizes = [16, 64], strides = [1, 1]} : vector<16x82xf32> to vector<16x64xf32>
    %150 = vector.extract_strided_slice %125 {offsets = [0, 10], sizes = [16, 64], strides = [1, 1]} : vector<16x82xf32> to vector<16x64xf32>
    %cst_52 = arith.constant 0.000000e+00 : f32
    %151 = vector.shape_cast %132 : vector<1x64xi1> to vector<1x64xi1>
    %152 = vector.broadcast %151 : vector<1x64xi1> to vector<16x64xi1>
    %153 = vector.broadcast %cst_52 : f32 to vector<16x64xf32>
    %154 = arith.select %152, %150, %153 : vector<16x64xi1>, vector<16x64xf32>
    %155 = vector.extract_strided_slice %125 {offsets = [0, 16], sizes = [16, 64], strides = [1, 1]} : vector<16x82xf32> to vector<16x64xf32>
    %cst_53 = arith.constant 0.000000e+00 : f32
    %156 = vector.shape_cast %130 : vector<1x64xi1> to vector<1x64xi1>
    %157 = vector.broadcast %156 : vector<1x64xi1> to vector<16x64xi1>
    %158 = vector.broadcast %cst_53 : f32 to vector<16x64xf32>
    %159 = arith.select %157, %155, %158 : vector<16x64xi1>, vector<16x64xf32>
    %160 = vector.extract_strided_slice %125 {offsets = [0, 17], sizes = [16, 64], strides = [1, 1]} : vector<16x82xf32> to vector<16x64xf32>
    %161 = vector.extract_strided_slice %125 {offsets = [0, 18], sizes = [16, 64], strides = [1, 1]} : vector<16x82xf32> to vector<16x64xf32>
    %cst_54 = arith.constant 0.000000e+00 : f32
    %162 = vector.shape_cast %132 : vector<1x64xi1> to vector<1x64xi1>
    %163 = vector.broadcast %162 : vector<1x64xi1> to vector<16x64xi1>
    %164 = vector.broadcast %cst_54 : f32 to vector<16x64xf32>
    %165 = arith.select %163, %161, %164 : vector<16x64xi1>, vector<16x64xf32>
    %166 = tpu.concatenate %137, %138, %143, %148, %149, %154, %159, %160, %165 in 0 : vector<16x64xf32>, vector<16x64xf32>, vector<16x64xf32>, vector<16x64xf32>, vector<16x64xf32>, vector<16x64xf32>, vector<16x64xf32>, vector<16x64xf32>, vector<16x64xf32> -> vector<144x64xf32>
    %cst_55 = arith.constant dense<0.000000e+00> : vector<8x64xf32>
    %167 = tpu.matmul %122, %166, %cst_55 {dimension_numbers = #tpu.dot_dimension_numbers<[1], [0], [0], [1], [0, 0, 1, 1], [], []>} : vector<8x144xf32>, vector<144x64xf32>, vector<8x64xf32> -> vector<8x64xf32>
    %168 = vector.broadcast %123 : vector<8x1xf32> to vector<8x64xf32>
    %169 = arith.addf %167, %168 : vector<8x64xf32>
    %cst_56 = arith.constant 0.000000e+00 : f32
    %170 = vector.broadcast %cst_56 : f32 to vector<8x64xf32>
    %171 = arith.maximumf %169, %170 : vector<8x64xf32>
    %c0_57 = arith.constant 0 : index
    %c0_58 = arith.constant 0 : index
    %172 = vector.load %arg13[%c0_57, %c0_58] : memref<64x256xf32, #tpu.memory_space<vmem>>, vector<64x256xf32>
    %cst_59 = arith.constant dense<0.000000e+00> : vector<8x256xf32>
    %173 = tpu.matmul %171, %172, %cst_59 {dimension_numbers = #tpu.dot_dimension_numbers<[1], [0], [0], [1], [0, 0, 1, 1], [], []>} : vector<8x64xf32>, vector<64x256xf32>, vector<8x256xf32> -> vector<8x256xf32>
    %c0_60 = arith.constant 0 : index
    %c0_61 = arith.constant 0 : index
    %174 = vector.load %arg8[%c0_60, %c0_61] : memref<4x72xf32, #tpu.memory_space<vmem>>, vector<4x72xf32>
    %c0_62 = arith.constant 0 : index
    %c0_63 = arith.constant 0 : index
    %175 = vector.load %arg9[%c0_62, %c0_63] : memref<4x1xf32, #tpu.memory_space<vmem>>, vector<4x1xf32>
    %cst_64 = arith.constant 0.000000e+00 : f32
    %176 = vector.broadcast %cst_64 : f32 to vector<8x17xf32>
    %177 = tpu.concatenate %176, %173, %176 in 1 : vector<8x17xf32>, vector<8x256xf32>, vector<8x17xf32> -> vector<8x290xf32>
    %178 = tpu.iota {dimensions = array<i32: 1>} : vector<1x256xi32>
    %c15_i32_65 = arith.constant 15 : i32
    %179 = vector.broadcast %c15_i32_65 : i32 to vector<1x256xi32>
    %180 = arith.andi %178, %179 : vector<1x256xi32>
    %c0_i32_66 = arith.constant 0 : i32
    %181 = vector.broadcast %c0_i32_66 : i32 to vector<1x256xi32>
    %182 = arith.cmpi sgt, %180, %181 : vector<1x256xi32>
    %c15_i32_67 = arith.constant 15 : i32
    %183 = vector.broadcast %c15_i32_67 : i32 to vector<1x256xi32>
    %184 = arith.cmpi slt, %180, %183 : vector<1x256xi32>
    %185 = vector.extract_strided_slice %177 {offsets = [0, 0], sizes = [8, 256], strides = [1, 1]} : vector<8x290xf32> to vector<8x256xf32>
    %cst_68 = arith.constant 0.000000e+00 : f32
    %186 = vector.shape_cast %182 : vector<1x256xi1> to vector<1x256xi1>
    %187 = vector.broadcast %186 : vector<1x256xi1> to vector<8x256xi1>
    %188 = vector.broadcast %cst_68 : f32 to vector<8x256xf32>
    %189 = arith.select %187, %185, %188 : vector<8x256xi1>, vector<8x256xf32>
    %190 = vector.extract_strided_slice %177 {offsets = [0, 1], sizes = [8, 256], strides = [1, 1]} : vector<8x290xf32> to vector<8x256xf32>
    %191 = vector.extract_strided_slice %177 {offsets = [0, 2], sizes = [8, 256], strides = [1, 1]} : vector<8x290xf32> to vector<8x256xf32>
    %cst_69 = arith.constant 0.000000e+00 : f32
    %192 = vector.shape_cast %184 : vector<1x256xi1> to vector<1x256xi1>
    %193 = vector.broadcast %192 : vector<1x256xi1> to vector<8x256xi1>
    %194 = vector.broadcast %cst_69 : f32 to vector<8x256xf32>
    %195 = arith.select %193, %191, %194 : vector<8x256xi1>, vector<8x256xf32>
    %196 = vector.extract_strided_slice %177 {offsets = [0, 16], sizes = [8, 256], strides = [1, 1]} : vector<8x290xf32> to vector<8x256xf32>
    %cst_70 = arith.constant 0.000000e+00 : f32
    %197 = vector.shape_cast %182 : vector<1x256xi1> to vector<1x256xi1>
    %198 = vector.broadcast %197 : vector<1x256xi1> to vector<8x256xi1>
    %199 = vector.broadcast %cst_70 : f32 to vector<8x256xf32>
    %200 = arith.select %198, %196, %199 : vector<8x256xi1>, vector<8x256xf32>
    %201 = vector.extract_strided_slice %177 {offsets = [0, 17], sizes = [8, 256], strides = [1, 1]} : vector<8x290xf32> to vector<8x256xf32>
    %202 = vector.extract_strided_slice %177 {offsets = [0, 18], sizes = [8, 256], strides = [1, 1]} : vector<8x290xf32> to vector<8x256xf32>
    %cst_71 = arith.constant 0.000000e+00 : f32
    %203 = vector.shape_cast %184 : vector<1x256xi1> to vector<1x256xi1>
    %204 = vector.broadcast %203 : vector<1x256xi1> to vector<8x256xi1>
    %205 = vector.broadcast %cst_71 : f32 to vector<8x256xf32>
    %206 = arith.select %204, %202, %205 : vector<8x256xi1>, vector<8x256xf32>
    %207 = vector.extract_strided_slice %177 {offsets = [0, 32], sizes = [8, 256], strides = [1, 1]} : vector<8x290xf32> to vector<8x256xf32>
    %cst_72 = arith.constant 0.000000e+00 : f32
    %208 = vector.shape_cast %182 : vector<1x256xi1> to vector<1x256xi1>
    %209 = vector.broadcast %208 : vector<1x256xi1> to vector<8x256xi1>
    %210 = vector.broadcast %cst_72 : f32 to vector<8x256xf32>
    %211 = arith.select %209, %207, %210 : vector<8x256xi1>, vector<8x256xf32>
    %212 = vector.extract_strided_slice %177 {offsets = [0, 33], sizes = [8, 256], strides = [1, 1]} : vector<8x290xf32> to vector<8x256xf32>
    %213 = vector.extract_strided_slice %177 {offsets = [0, 34], sizes = [8, 256], strides = [1, 1]} : vector<8x290xf32> to vector<8x256xf32>
    %cst_73 = arith.constant 0.000000e+00 : f32
    %214 = vector.shape_cast %184 : vector<1x256xi1> to vector<1x256xi1>
    %215 = vector.broadcast %214 : vector<1x256xi1> to vector<8x256xi1>
    %216 = vector.broadcast %cst_73 : f32 to vector<8x256xf32>
    %217 = arith.select %215, %213, %216 : vector<8x256xi1>, vector<8x256xf32>
    %218 = tpu.concatenate %189, %190, %195, %200, %201, %206, %211, %212, %217 in 0 : vector<8x256xf32>, vector<8x256xf32>, vector<8x256xf32>, vector<8x256xf32>, vector<8x256xf32>, vector<8x256xf32>, vector<8x256xf32>, vector<8x256xf32>, vector<8x256xf32> -> vector<72x256xf32>
    %cst_74 = arith.constant dense<0.000000e+00> : vector<4x256xf32>
    %219 = tpu.matmul %174, %218, %cst_74 {dimension_numbers = #tpu.dot_dimension_numbers<[1], [0], [0], [1], [0, 0, 1, 1], [], []>} : vector<4x72xf32>, vector<72x256xf32>, vector<4x256xf32> -> vector<4x256xf32>
    %220 = vector.broadcast %175 : vector<4x1xf32> to vector<4x256xf32>
    %221 = arith.addf %219, %220 : vector<4x256xf32>
    %cst_75 = arith.constant 0.000000e+00 : f32
    %222 = vector.broadcast %cst_75 : f32 to vector<4x256xf32>
    %223 = arith.subf %222, %221 : vector<4x256xf32>
    %224 = math.exp %223 : vector<4x256xf32>
    %cst_76 = arith.constant 1.000000e+00 : f32
    %225 = vector.broadcast %cst_76 : f32 to vector<4x256xf32>
    %226 = arith.addf %225, %224 : vector<4x256xf32>
    %cst_77 = arith.constant 1.000000e+00 : f32
    %227 = vector.broadcast %cst_77 : f32 to vector<4x256xf32>
    %228 = arith.divf %227, %226 : vector<4x256xf32>
    %c0_78 = arith.constant 0 : index
    %c0_79 = arith.constant 0 : index
    %c0_80 = arith.constant 0 : index
    %229 = vector.load %arg14[%c0_78, %c0_79, %c0_80] : memref<1x4x256xf32, #tpu.memory_space<vmem>>, vector<1x4x256xf32>
    %230 = vector.shape_cast %229 : vector<1x4x256xf32> to vector<4x256xf32>
    %231 = vector.shape_cast %228 : vector<4x256xf32> to vector<1x4x256xf32>
    tpu.vector_store %arg14[%c0_78, %c0_79, %c0_80], %231 {strides = array<i32>} : memref<1x4x256xf32, #tpu.memory_space<vmem>>, vector<1x4x256xf32>,
    return
  }
  func.func @transform_0(%arg0: i32) -> (i32, i32, i32) {
    %c0_i32 = arith.constant 0 : i32
    %c0_i32_0 = arith.constant 0 : i32
    %c0_i32_1 = arith.constant 0 : i32
    return %arg0, %c0_i32, %c0_i32_0 : i32, i32, i32
  }
  func.func @transform_1(%arg0: i32) -> (i32, i32) {
    %c0_i32 = arith.constant 0 : i32
    %c0_i32_0 = arith.constant 0 : i32
    %c0_i32_1 = arith.constant 0 : i32
    return %c0_i32, %c0_i32_0 : i32, i32
  }
  func.func @transform_2(%arg0: i32) -> (i32, i32) {
    %c0_i32 = arith.constant 0 : i32
    %c0_i32_0 = arith.constant 0 : i32
    %c0_i32_1 = arith.constant 0 : i32
    return %c0_i32, %c0_i32_0 : i32, i32
  }
  func.func @transform_3(%arg0: i32) -> (i32, i32) {
    %c0_i32 = arith.constant 0 : i32
    %c0_i32_0 = arith.constant 0 : i32
    %c0_i32_1 = arith.constant 0 : i32
    return %c0_i32, %c0_i32_0 : i32, i32
  }
  func.func @transform_4(%arg0: i32) -> (i32, i32) {
    %c0_i32 = arith.constant 0 : i32
    %c0_i32_0 = arith.constant 0 : i32
    %c0_i32_1 = arith.constant 0 : i32
    return %c0_i32, %c0_i32_0 : i32, i32
  }
  func.func @transform_5(%arg0: i32) -> (i32, i32) {
    %c0_i32 = arith.constant 0 : i32
    %c0_i32_0 = arith.constant 0 : i32
    %c0_i32_1 = arith.constant 0 : i32
    return %c0_i32, %c0_i32_0 : i32, i32
  }
  func.func @transform_6(%arg0: i32) -> (i32, i32) {
    %c0_i32 = arith.constant 0 : i32
    %c0_i32_0 = arith.constant 0 : i32
    %c0_i32_1 = arith.constant 0 : i32
    return %c0_i32, %c0_i32_0 : i32, i32
  }
  func.func @transform_7(%arg0: i32) -> (i32, i32) {
    %c0_i32 = arith.constant 0 : i32
    %c0_i32_0 = arith.constant 0 : i32
    %c0_i32_1 = arith.constant 0 : i32
    return %c0_i32, %c0_i32_0 : i32, i32
  }
  func.func @transform_8(%arg0: i32) -> (i32, i32) {
    %c0_i32 = arith.constant 0 : i32
    %c0_i32_0 = arith.constant 0 : i32
    %c0_i32_1 = arith.constant 0 : i32
    return %c0_i32, %c0_i32_0 : i32, i32
  }
  func.func @transform_9(%arg0: i32) -> (i32, i32) {
    %c0_i32 = arith.constant 0 : i32
    %c0_i32_0 = arith.constant 0 : i32
    %c0_i32_1 = arith.constant 0 : i32
    return %c0_i32, %c0_i32_0 : i32, i32
  }
  func.func @transform_10(%arg0: i32) -> (i32, i32) {
    %c0_i32 = arith.constant 0 : i32
    %c0_i32_0 = arith.constant 0 : i32
    %c0_i32_1 = arith.constant 0 : i32
    return %c0_i32, %c0_i32_0 : i32, i32
  }
  func.func @transform_11(%arg0: i32) -> (i32, i32) {
    %c0_i32 = arith.constant 0 : i32
    %c0_i32_0 = arith.constant 0 : i32
    %c0_i32_1 = arith.constant 0 : i32
    return %c0_i32, %c0_i32_0 : i32, i32
  }
  func.func @transform_12(%arg0: i32) -> (i32, i32) {
    %c0_i32 = arith.constant 0 : i32
    %c0_i32_0 = arith.constant 0 : i32
    %c0_i32_1 = arith.constant 0 : i32
    return %c0_i32, %c0_i32_0 : i32, i32
  }
  func.func @transform_13(%arg0: i32) -> (i32, i32, i32) {
    %c0_i32 = arith.constant 0 : i32
    %c0_i32_0 = arith.constant 0 : i32
    %c0_i32_1 = arith.constant 0 : i32
    return %arg0, %c0_i32, %c0_i32_0 : i32, i32, i32
  }
}

</mosaic_0001>

<bundles_post_ra>
// kernel: autoencoder_forward.1
= control target key start
LH: loop header
LB: loop body
LE: loop exit
PB: predicated region body
PF: predicated region fallthrough
CT: control target
= control target key end

     0   :  { %s2241_s25 = smov 0   ;;  %s2796_s0 = inlined_call_operand.vmem [shape: f32[2,4,256], index: 0, kind: input, shape index: {}]   ;;  %s2797_s1 = inlined_call_operand.vmem [shape: f32[8,36], index: 1, kind: input, shape index: {}]   ;;  %s2798_s2 = inlined_call_operand.vmem [shape: f32[8,1], index: 2, kind: input, shape index: {}]   ;;  %s2799_s3 = inlined_call_operand.vmem [shape: f32[16,72], index: 3, kind: input, shape index: {}]   ;;  %s2800_s4 = inlined_call_operand.vmem [shape: f32[16,1], index: 4, kind: input, shape index: {}]   ;;  %s2801_s5 = inlined_call_operand.vmem [shape: f32[8,144], index: 5, kind: input, shape index: {}]   ;;  %s2802_s6 = inlined_call_operand.vmem [shape: f32[8,1], index: 6, kind: input, shape index: {}]   ;;  %s2803_s7 = inlined_call_operand.vmem [shape: f32[4,72], index: 7, kind: input, shape index: {}]   ;;  %s2804_s8 = inlined_call_operand.vmem [shape: f32[4,1], index: 8, kind: input, shape index: {}]   ;;  %s2805_s9 = inlined_call_operand.vmem [shape: f32[256,64], index: 9, kind: input, shape index: {}]   ;;  %s2806_s10 = inlined_call_operand.vmem [shape: f32[64,16], index: 10, kind: input, shape index: {}]   ;;  %s2807_s11 = inlined_call_operand.vmem [shape: f32[16,64], index: 11, kind: input, shape index: {}]   ;;  %s2808_s12 = inlined_call_operand.vmem [shape: f32[64,256], index: 12, kind: input, shape index: {}]   ;;  %s2809_s13 = inlined_call_operand.vmem [shape: f32[2,4,256], index: 13, kind: output, shape index: {}]  }
   0x1 LB: > { %s1666_s26 = sadd.s32 4294967295, %s2152_s25   ;;  %p1670_p0 = scmp.ge.s32.totalorder %s2152_s25, 1  ;;  %s2152_s25 = sphi %s2241_s25, %s23_s25  }
   0x2   : > { %p387_p1 = scmp.lt.s32.totalorder %s2152_s25, 3 }
   0x4   : > { %p388_p2 = pnand %p1670_p0, %p387_p1 }
   0x5   : > { %p431_p3 = scmp.lt.s32.totalorder (!%p388_p2), %s1666_s26, 1  ;;  %s2817_s14 = smov (!%p388_p2), 17   ;;  %vm450_vm0 = vcmask (!%p388_p2), 138240   ;;  %v2162_v12 = vmov (!%p388_p2), 0.0   ;;  %v2163_v13 = vmov (!%p388_p2), 0   ;;  %v443_v14 = vld [vmem:[%s2798_s2] sm:$0xff] (!%p388_p2)  ;;  %v457_v16 = vlaneseq (!%p388_p2) }
   0x6   : > { %391 = sbr.rel (%p388_p2) target bundleno = 3313 (0xcf1), region = 72  ;;  %s2830_s15 = smov (!%p388_p2), 112   ;;  %679 = vmatprep.mubr.f32.mxu0 (!%p388_p2), %v2162_v12  ;;  %2045 = vset.pattern.permute.xlu1 (!%p388_p2), %v2163_v13  ;;  %vm2824_vm5 = vcmask (!%p388_p2), 1031168   ;;  %vm2820_vm6 = vcmask (!%p388_p2), 785408   ;;  %vm497_vm7 = vcmask (!%p388_p2), 916480   ;;  %vm2822_vm8 = vcmask (!%p388_p2), 900096  }
   0x7   : > { %s2156_s16 = smov (!%p388_p2), 126   ;;  %s2827_s17 = smov (!%p388_p2), 110   ;;  %2056 = vset.pattern.permute.xlu0 (!%p388_p2), %v2163_v13  ;;  %v2297_v18 = vand.u32 (!%p388_p2), 127, %v457_v16  ;;  %vm2823_vm9 = vcmask (!%p388_p2), 908288   ;;  %vm591_vm10 = vcmask (!%p388_p2), 1043456   ;;  %vm552_vm11 = vcmask (!%p388_p2), 1039360  }
   0x8   : > { %s2158_s18 = smov (!%p388_p2), 127   ;;  %s2815_s19 = smov (!%p388_p2), 96   ;;  %vm2821_vm12 = vcmask (!%p388_p2), 777216   ;;  %vm2819_vm13 = vcmask (!%p388_p2), 769024   ;;  %vm605_vm14 = vcmask (!%p388_p2), 293888   ;;  %vm827_vm15 = vcmask (!%p388_p2), 72704  }
   0x9   : > { %s2825_s20 = smov (!%p388_p2), 111   ;;  %s2813_s21 = smov (!%p388_p2), 95   ;;  %v459_v20 = vadd.s32 (!%p388_p2), 128, %v2297_v18  ;;  %v460_v22 = vand.u32 (!%p388_p2), 15, %v2297_v18 }
   0xa   : > { %s2811_s22 = smov (!%p388_p2), 94   ;;  %s2165_s28 = smov (!%p388_p2), 9  }
   0xb   : > { %v461_v24 = vand.u32 (!%p388_p2), 15, %v459_v20  ;;  %vm2301_vm1 = vcmp.gt.s32.totalorder (!%p388_p2), %v460_v22, 0  ;;  %vm2309_vm3 = vcmp.lt.s32.totalorder (!%p388_p2), %v460_v22, 15  ;;  %s2829_s29 = smov (!%p388_p2), 118   ;;  %s2856_s23 = smov (!%p388_p2), 95  }
   0xd   : > { %s2876_s26 = smov (!%p431_p3, %s1666_s26), 1  ;;  %vm2305_vm2 = vcmp.gt.s32.totalorder %v461_v24, 0  ;;  %vm2313_vm4 = vcmp.lt.s32.totalorder %v461_v24, 15 }
   0xe   : > { %s2810_s27 = sshll.u32 %s2876_s26, 3 }
   0xf   : > { %s435_s30 = scalar_lea.vmem %s2796_s0, %s2810_s27  ;;  %s2849_s27 = smov 110  }
  0x10   : > { %v441_v0 = vld [vmem:[%s435_s30] sm:$0xff]  ;;  %s2855_s30 = smov 96  }
  0x11   : > { %446 = vrot.lane.b32.xlu0 %v441_v0, %s2817_s14  ;;  %v445_v1 = vcombine.high %v441_v0, %v441_v0 }
  0x15   : > { %448 = vrot.lane.b32.xlu0 %v445_v1, %s2817_s14  ;;  %s2854_s14 = smov 112  }
  0x83   : > { %v447_v2 = vpop.permute.xlu0 %446 }
  0x84   : > { %v2260_v3 = vsel %vm450_vm0, 0.0, %v447_v2 }
  0x85   : > { %491 = vrot.lane.b32.xlu1 %v2260_v3, %s2830_s15  ;;  %v543_v8 = vrot.slane %v2260_v3, 4  ;;  %v470_v34 = vsel %vm2301_vm1, %v2260_v3, 0.0 }
  0x87   : > { %v449_v4 = vpop.permute.xlu0 %448 }
  0x88   : > { %v2265_v5 = vsel %vm450_vm0, %v447_v2, %v449_v4  ;;  %v456_v6 = vsel %vm450_vm0, %v449_v4, 0.0 }
  0x89   : > { %478 = vrot.lane.b32.xlu1 %v2260_v3, %s2156_s16  ;;  %v2015_v7 = vpack.i.bf16 %v456_v6, %v2265_v5  ;;  %v544_v9 = vrot.slane %v2265_v5, 4  ;;  %v545_v10 = vrot.slane %v456_v6, 4  ;;  %v471_v37 = vsel %vm2305_vm2, %v2265_v5, 0.0 }
  0x8b   : > { %2016 = vrot.lane.b32.xlu0 %v2015_v7, %s2156_s16  ;;  %v2035_v11 = vpack.i.bf16 %v545_v10, %v544_v9 }
  0x8d   : > { %504 = vrot.lane.b32.xlu1 %v2260_v3, %s2827_s17 }
  0x8f   : > { %546 = vrot.lane.b32.xlu0 %v543_v8, %s2158_s18 }
  0x91   : > { %517 = vrot.lane.b32.xlu1 %v2260_v3, %s2815_s19 }
  0x93   : > { %2026 = vrot.lane.b32.xlu0 %v2015_v7, %s2815_s19  ;;  %s2168_s19 = smov 119  }
  0x95   : > { %2011 = vrot.lane.b32.xlu1 %v2015_v7, %s2830_s15 }
  0x97   : > { %2031 = vrot.lane.b32.xlu0 %v2015_v7, %s2825_s20 }
  0x99   : > { %2021 = vrot.lane.b32.xlu1 %v2015_v7, %s2827_s17 }
  0x9b   : > { %2036 = vrot.lane.b32.xlu0 %v2035_v11, %s2158_s18 }
  0x9d   : > { %2041 = vrot.lane.b32.xlu1 %v2035_v11, %s2813_s21 }
  0x9f   : > { %563 = vrot.lane.b32.xlu0 %v2260_v3, %s2825_s20 }
  0xa1   : > { %580 = vrot.lane.b32.xlu1 %v543_v8, %s2813_s21  ;;  %s2167_s21 = smov 120  }
  0xa3   : > { %532 = vrot.lane.b32.xlu0 %v2265_v5, %s2811_s22 }
  0xa5   : > { %534 = vrot.lane.b32.xlu1 %v456_v6, %s2811_s22 }
  0xa7   : > { %530 = vrot.lane.b32.xlu0 %v2260_v3, %s2811_s22 }
  0xa9   : > { %602 = vperm.xlu1 %2045, %v443_v14  }
  0xf7   : > { %v492_v15 = vpop.permute.xlu1 %491 }
  0xfb   : > { %v479_v17 = vpop.permute.xlu1 %478 }
  0xfd   : > { %v2017_v19 = vpop.permute.xlu0 %2016 }
  0xfe   : > { %v2019_v27 = vunpack.i.h.bf16 %v2017_v19  ;;  %v2018_v28 = vunpack.i.l.bf16 %v2017_v19 }
  0xff   : > { %v505_v21 = vpop.permute.xlu1 %504 }
 0x100   : > { %v486_v40 = vsel %vm2824_vm5, %v2018_v28, %v2019_v27  ;;  %v485_v44 = vsel %vm2824_vm5, %v479_v17, %v2018_v28 }
 0x101   : > { %v547_v23 = vpop.permute.xlu0 %546  ;;  %v490_v55 = vsel %vm2313_vm4, %v486_v40, 0.0  ;;  %v489_v56 = vsel %vm2309_vm3, %v485_v44, 0.0 }
 0x103   : > { %v518_v25 = vpop.permute.xlu1 %517 }
 0x105   : > { %v2027_v29 = vpop.permute.xlu0 %2026 }
 0x106   : > { %v2028_v38 = vunpack.i.l.bf16 %v2027_v29  ;;  %v2029_v41 = vunpack.i.h.bf16 %v2027_v29 }
 0x107   : > { %v2012_v33 = vpop.permute.xlu1 %2011 }
 0x108   : > { %v2014_v35 = vunpack.i.h.bf16 %v2012_v33  ;;  %v2013_v36 = vunpack.i.l.bf16 %v2012_v33  ;;  %v524_v53 = vsel %vm2820_vm6, %v518_v25, %v2028_v38  ;;  %v525_v62 = vsel %vm2820_vm6, %v2028_v38, %v2029_v41  ;;  %v442_v41 = vld [vmem:[%s2797_s1] sm:$0xff] }
 0x109   : > { %v2032_v39 = vpop.permute.xlu0 %2031  ;;  %vm2169_vm6 = vmmov 1  }
 0x10a   : > { %v498_v42 = vsel %vm497_vm7, %v492_v15, %v2013_v36  ;;  %v499_v43 = vsel %vm497_vm7, %v2013_v36, %v2014_v35  ;;  %v2034_v45 = vunpack.i.h.bf16 %v2032_v39  ;;  %v2033_v46 = vunpack.i.l.bf16 %v2032_v39 }
 0x10b   : > { %v2022_v47 = vpop.permute.xlu1 %2021  ;;  %v503_v48 = vsel %vm2305_vm2, %v499_v43, 0.0  ;;  %v502_v49 = vsel %vm2301_vm1, %v498_v42, 0.0 }
 0x10c   : > { %v2024_v50 = vunpack.i.h.bf16 %v2022_v47  ;;  %v2023_v51 = vunpack.i.l.bf16 %v2022_v47  ;;  %v560_v52 = vrot.slane %v503_v48, 4  ;;  %v559_v57 = vrot.slane %v502_v49, 4  ;;  %v704_v47 = vld [vmem:[%s2805_s9 + $0x80] sm:$0xff]  ;;  %v705_v48 = vld [vmem:[%s2805_s9 + $0x88] sm:$0xff] }
 0x10d   : > { %v2037_v54 = vpop.permute.xlu0 %2036  ;;  %v571_v2 = vsel %vm2823_vm9, %v2033_v46, %v2034_v45  ;;  %v688_v49 = vld [vmem:[%s2805_s9] sm:$0xff] }
 0x10e   : > { %v511_v58 = vsel %vm2822_vm8, %v505_v21, %v2023_v51  ;;  %v512_v59 = vsel %vm2822_vm8, %v2023_v51, %v2024_v50  ;;  %v2039_v60 = vunpack.i.h.bf16 %v2037_v54  ;;  %v2038_v61 = vunpack.i.l.bf16 %v2037_v54  ;;  %v707_v54 = vld [vmem:[%s2805_s9 + $0x98] sm:$0xff] }
 0x10f   : > { %v515_v63 = vsel %vm2309_vm3, %v511_v58, 0.0  ;;  %v516_v0 = vsel %vm2313_vm4, %v512_v59, 0.0  ;;  %v2042_v1 = vpop.permute.xlu1 %2041  ;;  %v595_v6 = vsel %vm591_vm10, %v490_v55, %v560_v52  ;;  %v594_v11 = vsel %vm591_vm10, %v489_v56, %v559_v57  ;;  %v689_v52 = vld [vmem:[%s2805_s9 + $0x8] sm:$0xff]  ;;  %v690_v58 = vld [vmem:[%s2805_s9 + $0x10] sm:$0xff]  ;;  %v691_v59 = vld [vmem:[%s2805_s9 + $0x18] sm:$0xff] }
 0x110   : > { %v577_v3 = vrot.slane %v516_v0, 4  ;;  %v2044_v4 = vunpack.i.h.bf16 %v2042_v1  ;;  %v2043_v5 = vunpack.i.l.bf16 %v2042_v1  ;;  %v576_v7 = vrot.slane %v515_v63, 4  ;;  %v692_v1 = vld [vmem:[%s2805_s9 + $0x20] sm:$0xff] }
 0x111   : > { %v564_v8 = vpop.permute.xlu0 %563  ;;  %v554_v9 = vsel %vm552_vm11, %v2038_v61, %v2039_v60  ;;  %v553_v10 = vsel %vm552_vm11, %v547_v23, %v2038_v61  ;;  %v529_v21 = vsel %vm2305_vm2, %v525_v62, 0.0  ;;  %v528_v23 = vsel %vm2301_vm1, %v524_v53, 0.0  ;;  %v706_v53 = vld [vmem:[%s2805_s9 + $0x90] sm:$0xff]  ;;  %v708_v60 = vld [vmem:[%s2805_s9 + $0xa0] sm:$0xff]  ;;  %v709_v61 = vld [vmem:[%s2805_s9 + $0xa8] sm:$0xff] }
 0x112   : > { %v570_v13 = vsel %vm2823_vm9, %v564_v8, %v2033_v46  ;;  %v593_v14 = vsel %vm591_vm10, %v471_v37, %v554_v9  ;;  %v592_v15 = vsel %vm591_vm10, %v470_v34, %v553_v10  ;;  %v588_v16 = vsel %vm2821_vm12, %v2043_v5, %v2044_v4  ;;  %v711_v4 = vld [vmem:[%s2805_s9 + $0xb8] sm:$0xff]  ;;  %v712_v9 = vld [vmem:[%s2805_s9 + $0xc0] sm:$0xff]  ;;  %v713_v10 = vld [vmem:[%s2805_s9 + $0xc8] sm:$0xff] }
 0x113   : > { %v581_v17 = vpop.permute.xlu1 %580  ;;  %v1828_v19 = vpack.c.bf16 %v595_v6, %v593_v14  ;;  %v1830_v20 = vpack.c.bf16 %v594_v11, %v592_v15  ;;  %v597_v22 = vsel %vm591_vm10, %v571_v2, %v577_v3  ;;  %v599_v25 = vsel %vm591_vm10, %v529_v21, %v588_v16  ;;  %v693_v2 = vld [vmem:[%s2805_s9 + $0x28] sm:$0xff]  ;;  %v710_v3 = vld [vmem:[%s2805_s9 + $0xb0] sm:$0xff]  ;;  %v695_v8 = vld [vmem:[%s2805_s9 + $0x38] sm:$0xff] }
 0x114   : > { %v587_v24 = vsel %vm2821_vm12, %v581_v17, %v2043_v5  ;;  %v596_v27 = vsel %vm591_vm10, %v570_v13, %v576_v7  ;;  %v1832_v33 = vpack.c.bf16 %v599_v25, %v597_v22  ;;  %v1836_v51 = vpack.c.bf16 %v705_v48, %v704_v47  ;;  %v694_v7 = vld [vmem:[%s2805_s9 + $0x30] sm:$0xff]  ;;  %v696_v14 = vld [vmem:[%s2805_s9 + $0x40] sm:$0xff]  ;;  %v697_v15 = vld [vmem:[%s2805_s9 + $0x48] sm:$0xff] }
 0x115   : > { %v598_v28 = vsel %vm591_vm10, %v528_v23, %v587_v24  ;;  %1829 = vmatprep.subr.bf16.mxu0 %v1828_v19  ;;  %v533_v29 = vpop.permute.xlu0 %532  ;;  %v1838_v56 = vpack.c.bf16 %v689_v52, %v688_v49  ;;  %v1840_v57 = vpack.c.bf16 %v707_v54, %v706_v53  ;;  %v1842_v63 = vpack.c.bf16 %v691_v59, %v690_v58  ;;  %v714_v16 = vld [vmem:[%s2805_s9 + $0xd0] sm:$0xff]  ;;  %v715_v17 = vld [vmem:[%s2805_s9 + $0xd8] sm:$0xff]  ;;  %v716_v24 = vld [vmem:[%s2805_s9 + $0xe0] sm:$0xff] }
 0x116   : > { %1831 = vmatpush1.bf16.msra.mxu0 %v1830_v20  ;;  %v1834_v34 = vpack.c.bf16 %v598_v28, %v596_v27  ;;  %1837 = vmatprep.subr.bf16.mxu1 %v1836_v51  ;;  %v1844_v0 = vpack.c.bf16 %v709_v61, %v708_v60  ;;  %v1846_v5 = vpack.c.bf16 %v693_v2, %v692_v1  ;;  %v698_v21 = vld [vmem:[%s2805_s9 + $0x50] sm:$0xff]  ;;  %v699_v22 = vld [vmem:[%s2805_s9 + $0x58] sm:$0xff]  ;;  %v717_v25 = vld [vmem:[%s2805_s9 + $0xe8] sm:$0xff]  ;;  %v831_v2 = vand.u32 7, %v2297_v18 }
 0x117   : > { %1833 = vmatprep.subr.bf16.mxu0 %v1832_v33  ;;  %v535_v35 = vpop.permute.xlu1 %534  ;;  %1839 = vmatpush3.bf16.msra.mxu1 %v1838_v56  ;;  %v1848_v6 = vpack.c.bf16 %v711_v4, %v710_v3  ;;  %v1850_v11 = vpack.c.bf16 %v695_v8, %v694_v7  ;;  %v1852_v13 = vpack.c.bf16 %v713_v10, %v712_v9  ;;  %v700_v28 = vld [vmem:[%s2805_s9 + $0x60] sm:$0xff]  ;;  %v822_v1 = vld [vmem:[%s2800_s4 + $0x8] sm:$0xff] }
 0x118   : > { %v538_v36 = vsel %vm2819_vm13, %v533_v29, %v535_v35  ;;  %1841 = vmatprep.subr.bf16.mxu1 %v1840_v57  ;;  %v1854_v19 = vpack.c.bf16 %v697_v15, %v696_v14  ;;  %v1856_v20 = vpack.c.bf16 %v715_v17, %v714_v16  ;;  %v1858_v23 = vpack.c.bf16 %v699_v22, %v698_v21  ;;  %v719_v35 = vld [vmem:[%s2805_s9 + $0xf8] sm:$0xff]  ;;  %v1163_v3 = vld [vmem:[%s2802_s6] sm:$0xff] }
 0x119   : > { %v542_v37 = vsel %vm2313_vm4, %v538_v36, 0.0  ;;  %v531_v38 = vpop.permute.xlu0 %530  ;;  %v1860_v27 = vpack.c.bf16 %v717_v25, %v716_v24  ;;  %v702_v36 = vld [vmem:[%s2805_s9 + $0x70] sm:$0xff]  ;;  %vm2525_vm8 = vcmp.lt.s32.totalorder %v831_v2, 7  ;;  %v963_v24 = vld [vmem:[%s2806_s10] sm:$0xff]  ;;  %v964_v25 = vld [vmem:[%s2806_s10 + $0x8] sm:$0xff] }
 0x11a   : > { %v537_v39 = vsel %vm2819_vm13, %v531_v38, %v533_v29  ;;  %1835 = vmatpush1.bf16.msra.mxu0 %v1834_v34  ;;  %v701_v29 = vld [vmem:[%s2805_s9 + $0x68] sm:$0xff]  ;;  %v718_v34 = vld [vmem:[%s2805_s9 + $0xf0] sm:$0xff]  ;;  %v703_v38 = vld [vmem:[%s2805_s9 + $0x78] sm:$0xff]  ;;  %vm2514_vm13 = vcmp.gt.s32.totalorder %v831_v2, 0 }
 0x11b   : > { %v541_v40 = vsel %vm2309_vm3, %v537_v39, 0.0  ;;  %1675 = vmatprep.subr.msk.mxu0 %vm591_vm10, %v542_v37  ;;  %1843 = vmatpush3.bf16.msra.mxu1 %v1842_v63  ;;  %v1862_v33 = vpack.c.bf16 %v701_v29, %v700_v28  ;;  %v1864_v37 = vpack.c.bf16 %v719_v35, %v718_v34  ;;  %v1866_v39 = vpack.c.bf16 %v703_v38, %v702_v36  ;;  %v819_v63 = vld [vmem:[%s2799_s3] sm:$0xff]  ;;  %vm2521_vm12 = vmpackc.low %vm2169_vm6, %vm2514_vm13  ;;  %v966_v34 = vld [vmem:[%s2806_s10 + $0x18] sm:$0xff] }
 0x11c   : > { %1845 = vmatprep.subr.bf16.mxu1 %v1844_v0  ;;  %v821_v0 = vld [vmem:[%s2800_s4] sm:$0xff]  ;;  %vm1875_vm9 = vmpackc.low %vm2514_vm13, %vm2525_vm8 }
 0x11d   : > { %vm1881_vm5 = vmpackc.low %vm2525_vm8, %vm2169_vm6  ;;  %v967_v36 = vld [vmem:[%s2806_s10 + $0x20] sm:$0xff] }
 0x11e   : > { %1676 = vmatpush1.msk.msra.mxu0 %vm591_vm10, %v541_v40  ;;  %vm829_vm10 = vcmask 596992  }
 0x11f   : > { %1677 = vmatmul.mubr.msk.f32.vlgmr.msra.gmra.mrb[0].mxu0 %vm605_vm14, %v442_v41  ;;  %1847 = vmatpush3.bf16.msra.mxu1 %v1846_v5  ;;  %vm879_vm14 = vcmask 588800  }
 0x120   : > { %1849 = vmatprep.subr.bf16.mxu1 %v1848_v6  ;;  %1799 = vmatprep.mubr.msk.f32.mxu0 %vm879_vm14, %v819_v63 }
 0x123   : > { %1851 = vmatpush3.bf16.msra.mxu1 %v1850_v11 }
 0x124   : > { %1853 = vmatprep.subr.bf16.mxu1 %v1852_v13 }
 0x127   : > { %1855 = vmatpush3.bf16.msra.mxu1 %v1854_v19  ;;  %v820_v19 = vld [vmem:[%s2799_s3 + $0x8] sm:$0xff] }
 0x128   : > { %v603_v42 = vpop.permute.xlu1 %602  ;;  %1857 = vmatprep.subr.bf16.mxu1 %v1856_v20 }
 0x12b   : > { %1859 = vmatpush3.bf16.msra.mxu1 %v1858_v23 }
 0x12c   : > { %1861 = vmatprep.subr.bf16.mxu1 %v1860_v27  ;;  %v965_v27 = vld [vmem:[%s2806_s10 + $0x10] sm:$0xff] }
 0x12d   : > { %v1896_v35 = vpack.c.bf16 %v966_v34, %v965_v27  ;;  %v1326_v27 = vld [vmem:[%s2808_s12 + $0x48] sm:$0xff]  ;;  %v1325_v34 = vld [vmem:[%s2808_s12 + $0x40] sm:$0xff] }
 0x12f   : > { %1863 = vmatpush3.bf16.msra.mxu1 %v1862_v33  ;;  %v1892_v33 = vpack.c.bf16 %v964_v25, %v963_v24  ;;  %v1321_v24 = vld [vmem:[%s2808_s12 + $0x20] sm:$0xff]  ;;  %v1323_v25 = vld [vmem:[%s2808_s12 + $0x30] sm:$0xff] }
 0x130   : > { %1865 = vmatprep.subr.bf16.mxu1 %v1864_v37  ;;  %v968_v37 = vld [vmem:[%s2806_s10 + $0x28] sm:$0xff] }
 0x133   : > { %1867 = vmatpush3.bf16.msra.mxu1 %v1866_v39 }
 0x1f2   : > { %v681_v43 = vpop.f32.mrb[0].mxu0 }
 0x1f3   : > { %v2372_v44 = vadd.f32 %v681_v43, %v603_v42  ;;  %v683_v45 = vpop.f32.mrb[1].mxu0 }
 0x1f4   : > { %v2374_v46 = vadd.f32 %v683_v45, %v603_v42 }
 0x1f5   : > { %v686_v50 = vmax.f32 %v2372_v44, 0.0 }
 0x1f6   : > { %v687_v55 = vmax.f32 %v2374_v46, 0.0 }
 0x1f7   : > { %723 = vrot.lane.b32.xlu1 %v686_v50, %s2158_s18 }
 0x1f8   : > { %v2046_v62 = vpack.i.bf16 %v2162_v12, %v687_v55 }
 0x1fa   : > { %2047 = vrot.lane.b32.xlu0 %v2046_v62, %s2158_s18 }
 0x269   : > { %v724_v43 = vpop.permute.xlu1 %723 }
 0x26c   : > { %v2048_v40 = vpop.permute.xlu0 %2047 }
 0x26d   : > { %v2050_v41 = vunpack.i.h.bf16 %v2048_v40  ;;  %v2049_v42 = vunpack.i.l.bf16 %v2048_v40 }
 0x26f   : > { %v730_v45 = vsel %vm552_vm11, %v2049_v42, %v2050_v41  ;;  %v729_v47 = vsel %vm552_vm11, %v724_v43, %v2049_v42  ;;  %v1900_v41 = vpack.c.bf16 %v968_v37, %v967_v36  ;;  %v969_v43 = vld [vmem:[%s2806_s10 + $0x30] sm:$0xff] }
 0x270   : > { %v733_v48 = vmax.f32 %v686_v50, %v729_v47  ;;  %v734_v49 = vmax.f32 %v687_v55, %v730_v45  ;;  %v970_v45 = vld [vmem:[%s2806_s10 + $0x38] sm:$0xff] }
 0x271   : > { %v1904_v47 = vpack.c.bf16 %v970_v45, %v969_v43 }
 0x272   : > { %737 = vrot.lane.b32.xlu1 %v733_v48, %s2830_s15  ;;  %v2051_v51 = vpack.i.bf16 %v2162_v12, %v734_v49 }
 0x274   : > { %2052 = vrot.lane.b32.xlu0 %v2051_v51, %s2830_s15 }
 0x2e4   : > { %v738_v56 = vpop.permute.xlu1 %737 }
 0x2e6   : > { %v2053_v52 = vpop.permute.xlu0 %2052 }
 0x2e7   : > { %v2055_v53 = vunpack.i.h.bf16 %v2053_v52  ;;  %v2054_v54 = vunpack.i.l.bf16 %v2053_v52 }
 0x2e9   : > { %v744_v57 = vsel %vm497_vm7, %v2054_v54, %v2055_v53  ;;  %v743_v58 = vsel %vm497_vm7, %v738_v56, %v2054_v54 }
 0x2ea   : > { %v748_v59 = vmax.f32 %v734_v49, %v744_v57  ;;  %v747_v44 = vmax.f32 %v733_v48, %v743_v58  ;;  %v1077_v48 = vld [vmem:[%s2807_s11] sm:$0xff]  ;;  %v1078_v49 = vld [vmem:[%s2807_s11 + $0x8] sm:$0xff] }
 0x2eb   : > { %v1908_v51 = vpack.c.bf16 %v1078_v49, %v1077_v48 }
 0x2ec   : > { %813 = vmatprep.mubr.f32.mxu1 %v748_v59 }
 0x2ed   : > { %814 = vmatmul.mubr.f32.vlgmr.msra.gmra.mrb[0].mxu1 %v747_v44  ;;  %1909 = vmatprep.subr.bf16.mxu1 %v1908_v51 }
 0x2ee   : > { %1911 = vmatpush3.bf16.msra.mxu1 %v1908_v51 }
 0x3c0   : > { %v1753_v46 = vpop.f32.mrb[0].mxu1 }
 0x3c1   : > { %v1754_v50 = vpop.f32.mrb[1].mxu1 }
 0x3c2   : > { %v1755_v55 = vadd.f32 %v1754_v50, %v1753_v46 }
 0x3c4   : > { %824 = vrot.lane.b32.xlu0 %v1755_v55, %s2165_s28 }
 0x436   : > { %v825_v60 = vpop.permute.xlu0 %824 }
 0x437   : > { %v828_v61 = vsel %vm827_vm15, 0.0, %v825_v60 }
 0x438   : > { %v830_v62 = vsel %vm829_vm10, %v828_v61, 0.0  ;;  %v2170_v61 = vmov 0.0|0.0  }
 0x439   : > { %840 = vrot.lane.b32.xlu0 %v830_v62, %s2156_s16  ;;  %860 = vrot.lane.b32.xlu1 %v830_v62, %s2158_s18 }
 0x43a   : > { %1912 = vmatprep.subr.bf16.mxu1 %v2170_v61 }
 0x43d   : > { %848 = vrot.lane.b32.xlu0 %v830_v62, %s2829_s29  ;;  %844 = vrot.lane.b32.xlu1 %v830_v62, %s2167_s21 }
 0x441   : > { %852 = vrot.lane.b32.xlu0 %v830_v62, %s2830_s15  ;;  %863 = vrot.lane.b32.xlu1 %v830_v62, %s2168_s19 }
 0x445   : > { %856 = vrot.lane.b32.xlu0 %v830_v62, %s2827_s17  ;;  %866 = vrot.lane.b32.xlu1 %v830_v62, %s2825_s20  ;;  %s2850_s17 = smov 111  }
 0x449   : > { %871 = vperm.xlu1 %2045, %v821_v0   ;;  %876 = vperm.xlu0 %2056, %v822_v1  }
 0x4ab   : > { %v841_v4 = vpop.permute.xlu0 %840  ;;  %v861_v5 = vpop.permute.xlu1 %860 }
 0x4ac   : > { %v1868_v7 = vpack.c.bf16 %v861_v5, %v830_v62 }
 0x4ae   : > { %1870 = vmatprep.subr.msk.bf16.mxu0 %vm2521_vm12, %v1868_v7 }
 0x4af   : > { %v849_v18 = vpop.permute.xlu0 %848  ;;  %1873 = vmatpush3.bf16.msk.msra.mxu0 %vm2521_vm12, %v1868_v7  ;;  %v845_v9 = vpop.permute.xlu1 %844 }
 0x4b0   : > { %v1874_v10 = vpack.c.bf16 %v845_v9, %v841_v4 }
 0x4b2   : > { %1876 = vmatprep.subr.msk.bf16.mxu0 %vm1875_vm9, %v1874_v10 }
 0x4b3   : > { %1879 = vmatpush3.bf16.msk.msra.mxu0 %vm1875_vm9, %v1874_v10  ;;  %v864_v11 = vpop.permute.xlu1 %863  ;;  %v853_v14 = vpop.permute.xlu0 %852  ;;  %vm1079_vm9 = vcmask 130048  }
 0x4b4   : > { %v1880_v13 = vpack.c.bf16 %v849_v18, %v864_v11  ;;  %v1331_v11 = vld [vmem:[%s2808_s12 + $0x70] sm:$0xff] }
 0x4b6   : > { %1882 = vmatprep.subr.msk.bf16.mxu0 %vm1881_vm5, %v1880_v13 }
 0x4b7   : > { %1885 = vmatpush3.bf16.msk.msra.mxu0 %vm1881_vm5, %v1880_v13  ;;  %v867_v15 = vpop.permute.xlu1 %866  ;;  %v857_v17 = vpop.permute.xlu0 %856  ;;  %vm971_vm5 = vcmask 523264   ;;  %v1162_v13 = vld [vmem:[%s2801_s5 + $0x8] sm:$0xff] }
 0x4b8   : > { %v1886_v16 = vpack.c.bf16 %v867_v15, %v853_v14  ;;  %v1318_v14 = vld [vmem:[%s2808_s12 + $0x8] sm:$0xff]  ;;  %v1320_v15 = vld [vmem:[%s2808_s12 + $0x18] sm:$0xff] }
 0x4ba   : > { %1888 = vmatprep.subr.msk.bf16.mxu0 %vm2521_vm12, %v1886_v16 }
 0x4bb   : > { %1891 = vmatpush3.bf16.msk.msra.mxu0 %vm2521_vm12, %v1886_v16  ;;  %vm2604_vm12 = vmpackc.low %vm2514_vm13, %vm2514_vm13  ;;  %v1317_v16 = vld [vmem:[%s2808_s12] sm:$0xff] }
 0x4bc   : > { %1797 = vmatprep.subr.msk.mxu0 %vm2525_vm8, %v857_v17  ;;  %vm2666_vm13 = vmpackc.low %vm2525_vm8, %vm2525_vm8 }
 0x4bf   : > { %1798 = vmatpush3.msk.msra.mxu0 %vm2525_vm8, %v857_v17  ;;  %v1945_v17 = vpack.c.bf16 %v1320_v15, %v1318_v14  ;;  %vm2740_vm8 = vmpackc.low %vm2169_vm6, %vm2301_vm1 }
 0x4c0   : > { %1800 = vmatmul.mubr.msk.f32.vlgmr.msra.gmra.mrb[2].mxu0 %vm879_vm14, %v820_v19  ;;  %1893 = vmatprep.subr.bf16.mxu0 %v1892_v33  ;;  %v1319_v19 = vld [vmem:[%s2808_s12 + $0x10] sm:$0xff] }
 0x4c1   : > { %1895 = vmatpush3.bf16.msra.mxu0 %v1892_v33 }
 0x4c2   : > { %1897 = vmatprep.subr.bf16.mxu0 %v1896_v35 }
 0x4c5   : > { %1899 = vmatpush3.bf16.msra.mxu0 %v1896_v35  ;;  %v1327_v35 = vld [vmem:[%s2808_s12 + $0x50] sm:$0xff] }
 0x4c6   : > { %1901 = vmatprep.subr.bf16.mxu0 %v1900_v41  ;;  %v1955_v36 = vpack.c.bf16 %v1327_v35, %v1325_v34 }
 0x4c8   : > { %v877_v20 = vpop.permute.xlu0 %876  ;;  %v872_v22 = vpop.permute.xlu1 %871 }
 0x4c9   : > { %1903 = vmatpush3.bf16.msra.mxu0 %v1900_v41 }
 0x4ca   : > { %1905 = vmatprep.subr.bf16.mxu0 %v1904_v47 }
 0x4cd   : > { %1907 = vmatpush3.bf16.msra.mxu0 %v1904_v47 }
 0x4ce   : > { %1946 = vmatprep.subr.bf16.mxu0 %v1945_v17 }
 0x593   : > { %v1801_v21 = vpop.f32.mrb[2].mxu0 }
 0x594   : > { %v952_v23 = vpop.f32.mrb[3].mxu0  ;;  %v958_v28 = vadd.f32 %v1801_v21, %v877_v20  ;;  %v1322_v20 = vld [vmem:[%s2808_s12 + $0x28] sm:$0xff]  ;;  %v1324_v21 = vld [vmem:[%s2808_s12 + $0x38] sm:$0xff] }
 0x595   : > { %v953_v29 = vadd.f32 %v952_v23, %v872_v22  ;;  %v1947_v22 = vpack.c.bf16 %v1319_v19, %v1317_v16  ;;  %v1949_v23 = vpack.c.bf16 %v1324_v21, %v1322_v20 }
 0x596   : > { %v962_v39 = vmax.f32 %v958_v28, 0.0  ;;  %v1328_v28 = vld [vmem:[%s2808_s12 + $0x58] sm:$0xff] }
 0x597   : > { %v961_v38 = vmax.f32 %v953_v29, 0.0  ;;  %v1951_v29 = vpack.c.bf16 %v1323_v25, %v1321_v24  ;;  %v1953_v33 = vpack.c.bf16 %v1328_v28, %v1326_v27  ;;  %v1408_v27 = vld [vmem:[%s2804_s8] sm:$0xf] }
 0x598   : > { %v973_v42 = vsel %vm971_vm5, %v962_v39, 0.0 }
 0x599   : > { %v972_v40 = vsel %vm971_vm5, %v961_v38, 0.0 }
 0x59a   : > { %976 = vrot.lane.b32.xlu1 %v972_v40, %s2158_s18 }
 0x59e   : > { %978 = vrot.lane.b32.xlu1 %v973_v42, %s2158_s18 }
 0x60c   : > { %v977_v52 = vpop.permute.xlu1 %976 }
 0x60d   : > { %v982_v53 = vmax.f32 %v961_v38, %v977_v52 }
 0x60f   : > { %v984_v54 = vsel %vm971_vm5, %v982_v53, 0.0 }
 0x610   : > { %988 = vrot.lane.b32.xlu0 %v984_v54, %s2167_s21  ;;  %v979_v56 = vpop.permute.xlu1 %978 }
 0x611   : > { %v983_v57 = vmax.f32 %v962_v39, %v979_v56 }
 0x613   : > { %v985_v58 = vsel %vm971_vm5, %v983_v57, 0.0 }
 0x614   : > { %990 = vrot.lane.b32.xlu1 %v985_v58, %s2167_s21 }
 0x682   : > { %v989_v59 = vpop.permute.xlu0 %988 }
 0x683   : > { %v994_v44 = vmax.f32 %v982_v53, %v989_v59 }
 0x685   : > { %1818 = vmatprep.mubr.msk.f32.mxu0 %vm971_vm5, %v994_v44 }
 0x686   : > { %v991_v46 = vpop.permute.xlu1 %990 }
 0x687   : > { %v995_v50 = vmax.f32 %v983_v57, %v991_v46 }
 0x689   : > { %1819 = vmatmul.mubr.msk.f32.vlgmr.msra.gmra.mrb[4].mxu0 %vm971_vm5, %v995_v50 }
 0x68a   : > { %1400 = vmatprep.mubr.f32.mxu0 %v2162_v12  ;;  %1948 = vmatpush1.bf16.msra.mxu0 %v1947_v22 }
 0x68b   : > { %1950 = vmatprep.subr.bf16.mxu0 %v1949_v23 }
 0x68e   : > { %1952 = vmatpush1.bf16.msra.mxu0 %v1951_v29 }
 0x68f   : > { %1954 = vmatprep.subr.bf16.mxu0 %v1953_v33 }
 0x692   : > { %1956 = vmatpush1.bf16.msra.mxu0 %v1955_v36 }
 0x75c   : > { %v1820_v55 = vpop.f32.mrb[4].mxu0 }
 0x75d   : > { %v1068_v60 = vpop.f32.mrb[5].mxu0 }
 0x75e   : > { %1825 = vmatprep.mubr.msk.f32.mxu1 %vm1079_vm9, %v1068_v60 }
 0x75f   : > { %1826 = vmatmul.mubr.msk.f32.vlgmr.msra.gmra.mrb[2].mxu1 %vm1079_vm9, %v1820_v55 }
 0x760   : > { %1702 = vmatprep.mubr.msk.f32.mxu1 %vm1079_vm9, %v1162_v13 }
 0x832   : > { %v1827_v62 = vpop.f32.mrb[2].mxu1 }
 0x833   : > { %v1152_v63 = vpop.f32.mrb[3].mxu1 }
 0x834   : > { %v2057_v0 = vpack.i.bf16 %v1827_v62, %v1152_v63 }
 0x836   : > { %2058 = vrot.lane.b32.xlu0 %v2057_v0, %s2165_s28  ;;  %s2848_s28 = smov 118  }
 0x8a8   : > { %v2059_v1 = vpop.permute.xlu0 %2058 }
 0x8a9   : > { %v2061_v2 = vunpack.i.h.bf16 %v2059_v1  ;;  %v2060_v4 = vunpack.i.l.bf16 %v2059_v1 }
 0x8ab   : > { %v1173_v5 = vsel %vm827_vm15, 0.0, %v2061_v2  ;;  %v1172_v6 = vsel %vm827_vm15, 0.0, %v2060_v4 }
 0x8ac   : > { %v1175_v7 = vsel %vm829_vm10, %v1173_v5, 0.0  ;;  %v1174_v18 = vsel %vm829_vm10, %v1172_v6, 0.0  ;;  %vm1968_vm10 = vmpackc.low %vm2305_vm2, %vm2313_vm4 }
 0x8ad   : > { %v2067_v9 = vpack.i.bf16 %v1175_v7, %v1174_v18  ;;  %v1913_v10 = vpack.c.bf16 %v1175_v7, %v1174_v18  ;;  %v1161_v7 = vld [vmem:[%s2801_s5] sm:$0xff]  ;;  %v1330_v18 = vld [vmem:[%s2808_s12 + $0x68] sm:$0xff] }
 0x8af   : > { %2068 = vrot.lane.b32.xlu0 %v2067_v9, %s2156_s16  ;;  %2063 = vrot.lane.b32.xlu1 %v2067_v9, %s2158_s18 }
 0x8b0   : > { %1915 = vmatpush1.bf16.msk.msra.mxu1 %vm2604_vm12, %v1913_v10 }
 0x8b1   : > { %1916 = vmatprep.subr.bf16.mxu1 %v2170_v61 }
 0x8b3   : > { %2078 = vrot.lane.b32.xlu0 %v2067_v9, %s2168_s19  ;;  %2073 = vrot.lane.b32.xlu1 %v2067_v9, %s2167_s21  ;;  %s2853_s19 = smov 17  }
 0x8b7   : > { %2088 = vrot.lane.b32.xlu0 %v2067_v9, %s2830_s15  ;;  %2083 = vrot.lane.b32.xlu1 %v2067_v9, %s2848_s28  ;;  %s2857_s28 = smov 94  }
 0x8bb   : > { %2098 = vrot.lane.b32.xlu0 %v2067_v9, %s2849_s27  ;;  %2093 = vrot.lane.b32.xlu1 %v2067_v9, %s2850_s17  ;;  %v1332_v9 = vld [vmem:[%s2808_s12 + $0x78] sm:$0xff] }
 0x8bc   : > { %v1957_v10 = vpack.c.bf16 %v1332_v9, %v1330_v18 }
 0x8be   : > { %1958 = vmatprep.subr.bf16.mxu0 %v1957_v10 }
 0x8bf   : > { %1240 = vperm.xlu1 %2045, %v1163_v3  }
 0x921   : > { %v2069_v37 = vpop.permute.xlu0 %2068  ;;  %v2064_v38 = vpop.permute.xlu1 %2063 }
 0x922   : > { %v2066_v39 = vunpack.i.h.bf16 %v2064_v38  ;;  %v2065_v40 = vunpack.i.l.bf16 %v2064_v38  ;;  %v2071_v41 = vunpack.i.h.bf16 %v2069_v37  ;;  %v2070_v42 = vunpack.i.l.bf16 %v2069_v37 }
 0x924   : > { %v1917_v43 = vpack.c.bf16 %v2066_v39, %v2065_v40  ;;  %v1920_v48 = vpack.c.bf16 %v2071_v41, %v2070_v42 }
 0x925   : > { %v2074_v45 = vpop.permute.xlu1 %2073  ;;  %v2079_v52 = vpop.permute.xlu0 %2078 }
 0x926   : > { %1918 = vmatpush1.bf16.msra.mxu1 %v1917_v43  ;;  %v2076_v49 = vunpack.i.h.bf16 %v2074_v45  ;;  %v2075_v51 = vunpack.i.l.bf16 %v2074_v45  ;;  %v2081_v53 = vunpack.i.h.bf16 %v2079_v52  ;;  %v2080_v54 = vunpack.i.l.bf16 %v2079_v52 }
 0x927   : > { %1919 = vmatprep.subr.bf16.mxu1 %v2170_v61 }
 0x928   : > { %v1924_v56 = vpack.c.bf16 %v2076_v49, %v2075_v51  ;;  %v1928_v8 = vpack.c.bf16 %v2081_v53, %v2080_v54 }
 0x929   : > { %v2084_v57 = vpop.permute.xlu1 %2083  ;;  %v2089_v44 = vpop.permute.xlu0 %2088 }
 0x92a   : > { %1922 = vmatpush1.bf16.msk.msra.mxu1 %vm2666_vm13, %v1920_v48  ;;  %v2086_v58 = vunpack.i.h.bf16 %v2084_v57  ;;  %v2085_v59 = vunpack.i.l.bf16 %v2084_v57  ;;  %v2091_v46 = vunpack.i.h.bf16 %v2089_v44  ;;  %v2090_v50 = vunpack.i.l.bf16 %v2089_v44 }
 0x92b   : > { %1923 = vmatprep.subr.bf16.mxu1 %v2170_v61 }
 0x92c   : > { %v1931_v55 = vpack.c.bf16 %v2086_v58, %v2085_v59  ;;  %v1935_v62 = vpack.c.bf16 %v2091_v46, %v2090_v50 }
 0x92d   : > { %v2094_v60 = vpop.permute.xlu1 %2093  ;;  %v2099_v1 = vpop.permute.xlu0 %2098 }
 0x92e   : > { %1926 = vmatpush1.bf16.msk.msra.mxu1 %vm2604_vm12, %v1924_v56  ;;  %v2096_v63 = vunpack.i.h.bf16 %v2094_v60  ;;  %v2095_v0 = vunpack.i.l.bf16 %v2094_v60  ;;  %v2101_v2 = vunpack.i.h.bf16 %v2099_v1  ;;  %v2100_v4 = vunpack.i.l.bf16 %v2099_v1 }
 0x92f   : > { %1927 = vmatprep.subr.bf16.mxu1 %v2170_v61 }
 0x930   : > { %v1939_v5 = vpack.c.bf16 %v2096_v63, %v2095_v0  ;;  %v1942_v6 = vpack.c.bf16 %v2101_v2, %v2100_v4 }
 0x932   : > { %1929 = vmatpush1.bf16.msra.mxu1 %v1928_v8 }
 0x933   : > { %1930 = vmatprep.subr.bf16.mxu1 %v2170_v61 }
 0x936   : > { %1933 = vmatpush1.bf16.msk.msra.mxu1 %vm2666_vm13, %v1931_v55 }
 0x937   : > { %1934 = vmatprep.subr.bf16.mxu1 %v2170_v61 }
 0x93a   : > { %1937 = vmatpush1.bf16.msk.msra.mxu1 %vm2604_vm12, %v1935_v62  ;;  %vm2866_vm12 = vcmask 900096  }
 0x93b   : > { %1938 = vmatprep.subr.bf16.mxu1 %v2170_v61 }
 0x93e   : > { %1940 = vmatpush1.bf16.msra.mxu1 %v1939_v5  ;;  %v1241_v13 = vpop.permute.xlu1 %1240 }
 0x93f   : > { %1941 = vmatprep.subr.bf16.mxu1 %v2170_v61  ;;  %v1329_v61 = vld [vmem:[%s2808_s12 + $0x60] sm:$0xff] }
 0x940   : > { %v1959_v3 = vpack.c.bf16 %v1331_v11, %v1329_v61 }
 0x942   : > { %1944 = vmatpush1.bf16.msk.msra.mxu1 %vm2666_vm13, %v1942_v6  ;;  %1960 = vmatpush1.bf16.msra.mxu0 %v1959_v3  ;;  %vm2867_vm13 = vmmov %vm2866_vm12 }
 0x945   : > { %1311 = vmatmul.mubr.f32.vlgmr.msra.gmra.mrb[4].mxu1 %v1161_v7 }
 0xa18   : > { %v1312_v14 = vpop.f32.mrb[4].mxu1 }
 0xa19   : > { %v1313_v15 = vadd.f32 %v1312_v14, %v1241_v13  ;;  %v1314_v16 = vpop.f32.mrb[5].mxu1 }
 0xa1b   : > { %v1316_v17 = vmax.f32 %v1313_v15, 0.0 }
 0xa1d   : > { %1703 = vmatmul.mubr.msk.f32.vlgmr.msra.gmra.mrb[6].mxu0 %vm971_vm5, %v1316_v17  ;;  %vm2864_vm5 = vcmask 908288  }
 0xa1e   : > { %1587 = vmatprep.mubr.f32.mxu0 %v2162_v12  ;;  %vm2865_vm9 = vmmov %vm2864_vm5 }
 0xaf0   : > { %v1402_v19 = vpop.f32.mrb[6].mxu0 }
 0xaf1   : > { %1411 = vrot.lane.b32.xlu0 %v1402_v19, %s2853_s19  ;;  %v1404_v20 = vpop.f32.mrb[7].mxu0 }
 0xaf2   : > { %1413 = vrot.lane.b32.xlu1 %v1404_v20, %s2853_s19 }
 0xb63   : > { %v1412_v21 = vpop.permute.xlu0 %1411 }
 0xb64   : > { %v1419_v22 = vsel %vm450_vm0, 0.0, %v1412_v21  ;;  %v1414_v23 = vpop.permute.xlu1 %1413 }
 0xb65   : > { %1425 = vrot.lane.b32.xlu0 %v1419_v22, %s2156_s16  ;;  %1485 = vrot.lane.b32.xlu1 %v1419_v22, %s2158_s18  ;;  %v1415_v12 = vsel %vm450_vm0, %v1412_v21, %v1414_v23  ;;  %v1420_v24 = vsel %vm450_vm0, %v1414_v23, 0.0  ;;  %vm2733_vm0 = vmpackc.low %vm2169_vm6, %vm2305_vm2  ;;  %v1407_v23 = vld [vmem:[%s2803_s7] sm:$0xf] }
 0xb66   : > { %v2112_v25 = vpack.i.bf16 %v1420_v24, %v1415_v12  ;;  %vm1974_vm2 = vmpackc.low %vm2313_vm4, %vm2169_vm6 }
 0xb69   : > { %1449 = vrot.lane.b32.xlu0 %v1419_v22, %s2849_s27  ;;  %1437 = vrot.lane.b32.xlu1 %v1419_v22, %s2854_s14 }
 0xb6d   : > { %1461 = vrot.lane.b32.xlu0 %v1419_v22, %s2855_s30  ;;  %1495 = vrot.lane.b32.xlu1 %v1419_v22, %s2850_s17 }
 0xb71   : > { %2113 = vrot.lane.b32.xlu1 %v2112_v25, %s2854_s14  ;;  %2103 = vrot.lane.b32.xlu0 %v2112_v25, %s2158_s18 }
 0xb75   : > { %2123 = vrot.lane.b32.xlu1 %v2112_v25, %s2850_s17  ;;  %2108 = vrot.lane.b32.xlu0 %v2112_v25, %s2156_s16 }
 0xb79   : > { %2133 = vrot.lane.b32.xlu1 %v2112_v25, %s2856_s23  ;;  %2118 = vrot.lane.b32.xlu0 %v2112_v25, %s2849_s27  ;;  %s2874_s27 = sshll.u32 %s2876_s26, 3 }
 0xb7a   : > { %s440_s15 = scalar_lea.vmem %s2809_s13, %s2874_s27 }
 0xb7d   : > { %1505 = vrot.lane.b32.xlu1 %v1419_v22, %s2856_s23  ;;  %2128 = vrot.lane.b32.xlu0 %v2112_v25, %s2855_s30 }
 0xb81   : > { %1477 = vrot.lane.b32.xlu1 %v1420_v24, %s2857_s28  ;;  %1475 = vrot.lane.b32.xlu0 %v1415_v12, %s2857_s28 }
 0xb85   : > { %1517 = vperm.xlu1 %2045, %v1408_v27   ;;  %1473 = vrot.lane.b32.xlu0 %v1419_v22, %s2857_s28 }
 0xbd7   : > { %v1426_v28 = vpop.permute.xlu0 %1425  ;;  %v1486_v29 = vpop.permute.xlu1 %1485 }
 0xbdb   : > { %v1450_v33 = vpop.permute.xlu0 %1449  ;;  %v1438_v34 = vpop.permute.xlu1 %1437 }
 0xbdf   : > { %v1462_v35 = vpop.permute.xlu0 %1461  ;;  %v1496_v36 = vpop.permute.xlu1 %1495 }
 0xbe3   : > { %v2104_v37 = vpop.permute.xlu0 %2103  ;;  %v2114_v38 = vpop.permute.xlu1 %2113 }
 0xbe4   : > { %v2106_v39 = vunpack.i.h.bf16 %v2104_v37  ;;  %v2105_v40 = vunpack.i.l.bf16 %v2104_v37  ;;  %v2116_v43 = vunpack.i.h.bf16 %v2114_v38  ;;  %v2115_v45 = vunpack.i.l.bf16 %v2114_v38 }
 0xbe6   : > { %v1491_v41 = vsel %vm552_vm11, %v1486_v29, %v2105_v40  ;;  %v1492_v42 = vsel %vm552_vm11, %v2105_v40, %v2106_v39  ;;  %v1443_v58 = vsel %vm497_vm7, %v1438_v34, %v2115_v45  ;;  %v1444_v59 = vsel %vm497_vm7, %v2115_v45, %v2116_v43  ;;  %vm1971_vm7 = vmpackc.low %vm2301_vm1, %vm2309_vm3 }
 0xbe7   : > { %v1961_v48 = vpack.c.bf16 %v1492_v42, %v1415_v12  ;;  %v1964_v49 = vpack.c.bf16 %v1491_v41, %v1419_v22  ;;  %v2109_v51 = vpop.permute.xlu0 %2108  ;;  %v2124_v52 = vpop.permute.xlu1 %2123  ;;  %vm2862_vm11 = vcmask 1031168   ;;  %vm1977_vm1 = vmpackc.low %vm2309_vm3, %vm2169_vm6  ;;  %vm2872_vm6 = vcmask 769024  }
 0xbe8   : > { %v2111_v54 = vunpack.i.h.bf16 %v2109_v51  ;;  %v2110_v56 = vunpack.i.l.bf16 %v2109_v51  ;;  %v2126_v57 = vunpack.i.h.bf16 %v2124_v52  ;;  %v2125_v8 = vunpack.i.l.bf16 %v2124_v52  ;;  %vm2863_vm15 = vmmov %vm2862_vm11 }
 0xbe9   : > { %1963 = vmatprep.subr.msk.bf16.mxu0 %vm2733_vm0, %v1961_v48 }
 0xbea   : > { %v1431_v44 = vsel %vm2862_vm11, %v1426_v28, %v2110_v56  ;;  %v1432_v46 = vsel %vm2863_vm15, %v2110_v56, %v2111_v54  ;;  %1966 = vmatpush1.bf16.msk.msra.mxu0 %vm2740_vm8, %v1964_v49  ;;  %v1501_v1 = vsel %vm2864_vm5, %v1496_v36, %v2125_v8  ;;  %v1502_v2 = vsel %vm2865_vm9, %v2125_v8, %v2126_v57  ;;  %vm2873_vm5 = vmmov %vm2872_vm6 }
 0xbeb   : > { %v1967_v50 = vpack.c.bf16 %v1444_v59, %v1432_v46  ;;  %v1970_v55 = vpack.c.bf16 %v1443_v58, %v1431_v44  ;;  %v2119_v60 = vpop.permute.xlu0 %2118  ;;  %v2134_v62 = vpop.permute.xlu1 %2133  ;;  %vm2868_vm11 = vcmask 777216   ;;  %vm2869_vm15 = vcmask 785408  }
 0xbec   : > { %v2121_v63 = vunpack.i.h.bf16 %v2119_v60  ;;  %v2120_v0 = vunpack.i.l.bf16 %v2119_v60  ;;  %v2136_v5 = vunpack.i.h.bf16 %v2134_v62  ;;  %v2135_v6 = vunpack.i.l.bf16 %v2134_v62 }
 0xbed   : > { %1969 = vmatprep.subr.msk.bf16.mxu0 %vm1968_vm10, %v1967_v50  ;;  %vm2870_vm10 = vmmov %vm2869_vm15 }
 0xbee   : > { %v1455_v4 = vsel %vm2866_vm12, %v1450_v33, %v2120_v0  ;;  %v1456_v30 = vsel %vm2867_vm13, %v2120_v0, %v2121_v63  ;;  %1972 = vmatpush1.bf16.msk.msra.mxu0 %vm1971_vm7, %v1970_v55  ;;  %v1512_v11 = vsel %vm2868_vm11, %v2135_v6, %v2136_v5  ;;  %vm2871_vm7 = vmmov %vm2868_vm11 }
 0xbef   : > { %v1973_v26 = vpack.c.bf16 %v1456_v30, %v1502_v2  ;;  %v1976_v7 = vpack.c.bf16 %v1455_v4, %v1501_v1  ;;  %v2129_v18 = vpop.permute.xlu0 %2128  ;;  %v1506_v9 = vpop.permute.xlu1 %1505 }
 0xbf0   : > { %v2131_v10 = vunpack.i.h.bf16 %v2129_v18  ;;  %v2130_v61 = vunpack.i.l.bf16 %v2129_v18  ;;  %v1511_v14 = vsel %vm2871_vm7, %v1506_v9, %v2135_v6 }
 0xbf1   : > { %1975 = vmatprep.subr.msk.bf16.mxu0 %vm1974_vm2, %v1973_v26 }
 0xbf2   : > { %v1468_v3 = vsel %vm2869_vm15, %v2130_v61, %v2131_v10  ;;  %v1467_v13 = vsel %vm2870_vm10, %v1462_v35, %v2130_v61  ;;  %1978 = vmatpush1.bf16.msk.msra.mxu0 %vm1977_vm1, %v1976_v7 }
 0xbf3   : > { %v1979_v15 = vpack.c.bf16 %v1512_v11, %v1468_v3  ;;  %v1982_v16 = vpack.c.bf16 %v1511_v14, %v1467_v13  ;;  %v1476_v17 = vpop.permute.xlu0 %1475  ;;  %v1478_v19 = vpop.permute.xlu1 %1477 }
 0xbf4   : > { %v1480_v20 = vsel %vm2872_vm6, %v1476_v17, %v1478_v19 }
 0xbf5   : > { %1981 = vmatprep.subr.msk.bf16.mxu0 %vm2733_vm0, %v1979_v15 }
 0xbf6   : > { %1984 = vmatpush1.bf16.msk.msra.mxu0 %vm2740_vm8, %v1982_v16 }
 0xbf7   : > { %v1474_v21 = vpop.permute.xlu0 %1473  ;;  %1714 = vmatprep.subr.msk.mxu0 %vm2313_vm4, %v1480_v20 }
 0xbf8   : > { %v1479_v22 = vsel %vm2873_vm5, %v1474_v21, %v1476_v17 }
 0xbfa   : > { %1715 = vmatpush1.msk.msra.mxu0 %vm2309_vm3, %v1479_v22 }
 0xbfb   : > { %1716 = vmatmul.mubr.msk.f32.vlgmr.msra.gmra.mrb[8].mxu0 %vm879_vm14, %v1407_v23 }
 0xc04   : > { %v1518_v12 = vpop.permute.xlu1 %1517 }
 0xcce   : > { %v1589_v24 = vpop.f32.mrb[8].mxu0 }
 0xccf   : > { %v1590_v25 = vadd.f32 %v1589_v24, %v1518_v12  ;;  %v1591_v27 = vpop.f32.mrb[9].mxu0 }
 0xcd0   : > { %v1592_v28 = vadd.f32 %v1591_v27, %v1518_v12 }
 0xcd1   : > { %v1594_v29 = vsub.f32 0.0, %v1590_v25 }
 0xcd2   : > { %v1595_v32 = vsub.f32 0.0, %v1592_v28 }
 0xcd3   : > { %v1596_v33 = vmul.f32 1.442695, %v1594_v29 }
 0xcd4   : > { %v1598_v34 = vmul.f32 1.442695, %v1595_v32 }
 0xcd5   : > { %2138 = vpow2.f32 %v1596_v33 }
 0xcd6   : > { %2140 = vpow2.f32 %v1598_v34 }
 0xcdf   : > { %v2139_v35 = vpop.eup %2138 }
 0xce0   : > { %v2141_v36 = vpop.eup %2140  ;;  %v1600_v37 = vadd.f32 1.0, %v2139_v35 }
 0xce1   : > { %v1601_v38 = vadd.f32 1.0, %v2141_v36 }
 0xce2   : > { %2142 = vrcp.f32 %v1600_v37 }
 0xce3   : > { %2144 = vrcp.f32 %v1601_v38 }
 0xcec   : > { %v2143_v31 = vpop.eup %2142 }
 0xced   : > { %v2145_v39 = vpop.eup %2144 }
 0xcee   : > { %v1608_v40 = vcombine.low %v2143_v31, %v2145_v39 }
 0xcf0   : > { %1610 = vst [vmem:[%s440_s15] sm:$0xff] %v1608_v40 }
 0xcf1 PF: > { %s23_s25 = sadd.s32 1, %s2152_s25  }
 0xcf2   : > { %p20_p4 = scmp.ge.s32.totalorder %s23_s25, 4  }
 0xcf4   :  { %22 = sbr.rel (!%p20_p4) target bundleno = 1 (0x1), region = 102 }

</bundles_post_ra>
